<compile_context>
chip_gen: v7x
topology: tpu7x:2x2x1
jax: 0.10.0
libtpu: 0.0.40
codegen_flags: <defaults>
</compile_context>

<pallas_src>
import jax
import jax.numpy as jnp
from jax import lax
from jax.experimental import pallas as pl
from jax.experimental.pallas import tpu as pltpu

_KZZ_JITTER = 1e-3   # gpytorch LazyTensor.add_jitter() default on K_ZZ
_KXX_JITTER = 1e-4   # .add_jitter(0.0001) on data_data_covar


def _gp_forward_kernel(scal_ref,                 # SMEM (3*B,): [lengthscale | outputscale | mean_const]
                       pts_ref,                  # VMEM (B, M+N, D): [Z_b ; x_b] stacked per batch
                       vm_ref,                   # VMEM (B, 1, M): variational mean (row layout)
                       smi_ref,                  # VMEM (B, M, M): Lv Lv^T - I   (precomputed)
                       mean_ref, covar_ref,      # outputs (B,1,N), (B,N,N)
                       interp_sc):               # VMEM scratch (M, N) f32
    B, P, D = pts_ref.shape
    M = smi_ref.shape[1]
    N = mean_ref.shape[2]
    f32 = jnp.float32

    # Jitter masks + constants, built once per kernel invocation (hoisted out of the loop).
    eye_m = (jax.lax.broadcasted_iota(jnp.int32, (M, M), 0)
             == jax.lax.broadcasted_iota(jnp.int32, (M, M), 1)).astype(f32)
    eye_n = (jax.lax.broadcasted_iota(jnp.int32, (N, N), 0)
             == jax.lax.broadcasted_iota(jnp.int32, (N, N), 1)).astype(f32)
    ones_row = jnp.ones((1, D), f32)

    c_last = (((1,), (1,)), ((), ()))   # A @ B^T  (contract trailing feature dim)
    c_std = (((1,), (0,)), ((), ()))    # A @ B
    c_lead = (((0,), (0,)), ((), ()))   # A^T @ B

    for b in range(B):                  # B is tiny & static -> fully unrolled
        ls = scal_ref[b]
        osc = scal_ref[B + b]
        mc = scal_ref[2 * B + b]
        gamma = -0.5 / (ls * ls)        # softplus-positive lengthscale in the source module

        # --- All three scaled-RBF kernel matrices from ONE stacked point set -----------
        pb = pts_ref[b]                                                  # (P, D), P = M + N
        pp = pb * pb
        gram = lax.dot_general(pb, pb, c_last, preferred_element_type=f32)       # (P, P)  MXU
        sq_row = lax.dot_general(ones_row, pp, c_last, preferred_element_type=f32)  # (1, P)
        sq_col = jnp.sum(pp, axis=1, keepdims=True)                               # (P, 1)
        sqd = jnp.maximum(sq_col + sq_row - 2.0 * gram, 0.0)   # clamp guards cancellation
        kall = osc * jnp.exp(gamma * sqd)                       # one (P,P) EUP exp per batch

        kzz = kall[:M, :M] + _KZZ_JITTER * eye_m                # jitters folded on the slices
        kzx = kall[:M, M:]
        kxx = kall[M:, M:] + _KXX_JITTER * eye_n

        # --- Fused unrolled Cholesky (outer-product form) + forward triangular solve ---
        #   L L^T = kzz,   interp = L^{-1} kzx
        # NOTE: `l_row = a[j:j+1,:] * inv_d` relies on `a` staying exactly symmetric under
        # the rank-1 Schur updates — keep any future edits (asymmetric jitter, fused
        # scaling, ...) away from this invariant.
        # TODO(synk): gpytorch promotes K_ZZ to float64 for psd_safe_cholesky; TPU has no
        # fast f64, so this stays f32 (the 1e-3 jitter keeps the 8x8 system benign).
        a = kzz                                   # running Schur complement
        y = kzx                                   # running RHS of the forward solve
        for j in range(M):                        # M=8, fully unrolled
            inv_d = jax.lax.rsqrt(a[j:j + 1, j:j + 1])           # (1,1) pivot, exact EUP rsqrt
            l_col = a[:, j:j + 1] * inv_d                        # (M,1) column j of L
            l_row = a[j:j + 1, :] * inv_d                        # (1,M) (symmetry of a)
            x_row = y[j:j + 1, :] * inv_d                        # (1,N) row j of interp
            interp_sc[pl.ds(j, 1), :] = x_row                    # direct row write (no mask)
            a = a - l_col * l_row                                # rank-1 Schur update (VPU)
            y = y - l_col * x_row                                # forward-substitution update
        interp = interp_sc[...]                                  # (M, N)

        # --- Predictive mean:  interp^T m + const   (kept as a (1,N) row) --------------
        vm_row = vm_ref[b]                                                         # (1, M)
        mean_row = lax.dot_general(vm_row, interp, c_std,
                                   preferred_element_type=f32) + mc
        mean_ref[b] = mean_row.astype(mean_ref.dtype)

        # --- Predictive covariance:  kxx + 1e-4 I + interp^T (Lv Lv^T - I) interp ------
        tmp = lax.dot_general(smi_ref[b], interp, c_std, preferred_element_type=f32)   # (M,N)
        quad = lax.dot_general(interp, tmp, c_lead, preferred_element_type=f32)        # (N,N)
        covar_ref[b] = (kxx + quad).astype(covar_ref.dtype)


@jax.jit
def gp_module_forward(params, x):
    """Returns (predictive_mean (B, N), predictive_covar (B, N, N))."""
    Z = params["inducing_points"]          # (B, M, D)
    ls = params["lengthscale"]             # (B,)
    osc = params["outputscale"]            # (B,)
    mc = params["mean_constant"]           # (B,)
    vm = params["variational_mean"]        # (B, M)
    Lv = params["chol_variational_covar"]  # (B, M, M) lower triangular

    B, M, D = Z.shape
    N = x.shape[1]

    # Pack the three per-batch scalars into one 1-D SMEM array (a 2-D SMEM ref would pad
    # to [8,128] words).
    scal = jnp.concatenate([ls, osc, mc]).astype(jnp.float32)          # (3*B,)
    # Stack inducing inputs and test inputs so the kernel builds all three RBF matrices
    # from a single Gram matrix (also: one pallas operand instead of two).
    pts = jnp.concatenate([Z, x], axis=1)                              # (B, M+N, D)
    # S - I = Lv Lv^T - I is parameter-only -> cacheable; computed here once per call.
    smi = Lv @ jnp.swapaxes(Lv, -1, -2) - jnp.eye(M, dtype=Lv.dtype)[None]

    smem = pl.BlockSpec(memory_space=pltpu.MemorySpace.SMEM)
    vmem = pl.BlockSpec(memory_space=pltpu.MemorySpace.VMEM)

    mean, covar = pl.pallas_call(
        _gp_forward_kernel,
        out_shape=(
            jax.ShapeDtypeStruct((B, 1, N), x.dtype),
            jax.ShapeDtypeStruct((B, N, N), x.dtype),
        ),
        in_specs=[smem, vmem, vmem, vmem],
        out_specs=(vmem, vmem),
        scratch_shapes=[pltpu.VMEM((M, N), jnp.float32)],
    )(scal, pts, vm.reshape(B, 1, M), smi)

    return mean.reshape(B, N), covar


# --------------------------------------------------------------------------
# Pure-JAX reference (same math, standard linalg) for a sanity check
# --------------------------------------------------------------------------
def _ref_forward(params, x):
    Z = params["inducing_points"]
    ls = params["lengthscale"][:, None, None]
    osc = params["outputscale"][:, None, None]

    def k(a, b):
        sq = jnp.sum((a[:, :, None, :] - b[:, None, :, :]) ** 2, axis=-1)
        return osc * jnp.exp(-0.5 * sq / (ls * ls))

    B, M, _ = Z.shape
    N = x.shape[1]
    kzz = k(Z, Z) + 1e-3 * jnp.eye(M)[None]
    kzx = k(Z, x)
    kxx = k(x, x)
    L = jnp.linalg.cholesky(kzz)
    interp = jax.scipy.linalg.solve_triangular(L, kzx, lower=True)
    S = params["chol_variational_covar"] @ jnp.swapaxes(params["chol_variational_covar"], -1, -2)
    mean = jnp.einsum("bmn,bm->bn", interp, params["variational_mean"]) \
        + params["mean_constant"][:, None]
    covar = kxx + 1e-4 * jnp.eye(N)[None] \
        + jnp.einsum("bmn,bmk,bkl->bnl", interp, S - jnp.eye(M)[None], interp)
    return mean, covar


if __name__ == "__main__":
    key = jax.random.PRNGKey(0)
    GP_dim = 2      # batch_size in GP_Module.__init__
    M = 8           # num inducing points
    D = 3           # input dim of each inducing / test point
    N = 8           # number of test points

    k_z, k_x, k_vm, k_lv = jax.random.split(key, 4)

    # deterministic parameter init (mimicking gpytorch defaults where sensible:
    # raw params = 0 -> softplus(0) = ln(2) for lengthscale / outputscale)
    ln2 = jnp.log(jnp.array(2.0, jnp.float32))
    params = {
        "inducing_points": jax.random.normal(k_z, (GP_dim, M, D), jnp.float32),
        "lengthscale": jnp.full((GP_dim,), ln2, jnp.float32),
        "outputscale": jnp.full((GP_dim,), ln2, jnp.float32),
        "mean_constant": jnp.array([0.1, -0.2], jnp.float32),
        "variational_mean": 0.1 * jax.random.normal(k_vm, (GP_dim, M), jnp.float32),
        "chol_variational_covar": jnp.eye(M, dtype=jnp.float32)[None]
        + 0.05 * jnp.tril(jax.random.normal(k_lv, (GP_dim, M, M), jnp.float32)),
    }

    x = jax.random.normal(k_x, (GP_dim, N, D), jnp.float32)

    mean, covar = gp_module_forward(params, x)
    jax.block_until_ready((mean, covar))

    ref_mean, ref_covar = _ref_forward(params, x)
    assert mean.shape == (GP_dim, N) and covar.shape == (GP_dim, N, N)
    # Tolerance: the norm-expansion sqdist (vs the reference's exact diff^2) introduces
    # O(1e-5)-level f32 differences that the tiny Cholesky/solve can amplify slightly.
    assert jnp.allclose(mean, ref_mean, atol=1e-3, rtol=1e-3)
    assert jnp.allclose(covar, ref_covar, atol=1e-3, rtol=1e-3)

    print("KERNEL_OK")
</pallas_src>

<mosaic_0001>
module attributes {stable_mosaic.version = 11 : i64} {
  func.func @_gp_forward_kernel(%arg0: memref<6xf32, #tpu.memory_space<smem>>, %arg1: memref<2x16x3xf32, #tpu.memory_space<vmem>>, %arg2: memref<2x1x8xf32, #tpu.memory_space<vmem>>, %arg3: memref<2x8x8xf32, #tpu.memory_space<vmem>>, %arg4: memref<2x1x8xf32, #tpu.memory_space<vmem>>, %arg5: memref<2x8x8xf32, #tpu.memory_space<vmem>>, %arg6: memref<8x8xf32, #tpu.memory_space<vmem>>) attributes {dimension_semantics = [], scalar_prefetch = 0 : i64, scratch_operands = 1 : i64, tpu.core_type = #tpu.core_type<tc>} {
    %0 = tpu.iota {dimensions = array<i32: 0>} : vector<8x8xi32>
    %1 = tpu.iota {dimensions = array<i32: 1>} : vector<8x8xi32>
    %2 = arith.cmpi eq, %0, %1 : vector<8x8xi32>
    %3 = arith.extui %2 : vector<8x8xi1> to vector<8x8xi32>
    %4 = arith.sitofp %3 : vector<8x8xi32> to vector<8x8xf32>
    %5 = tpu.iota {dimensions = array<i32: 0>} : vector<8x8xi32>
    %6 = tpu.iota {dimensions = array<i32: 1>} : vector<8x8xi32>
    %7 = arith.cmpi eq, %5, %6 : vector<8x8xi32>
    %8 = arith.extui %7 : vector<8x8xi1> to vector<8x8xi32>
    %9 = arith.sitofp %8 : vector<8x8xi32> to vector<8x8xf32>
    %cst = arith.constant 1.000000e+00 : f32
    %10 = vector.broadcast %cst : f32 to vector<1x3xf32>
    %c0 = arith.constant 0 : index
    %11 = memref.load %arg0[%c0] : memref<6xf32, #tpu.memory_space<smem>>
    %c2 = arith.constant 2 : index
    %12 = memref.load %arg0[%c2] : memref<6xf32, #tpu.memory_space<smem>>
    %c4 = arith.constant 4 : index
    %13 = memref.load %arg0[%c4] : memref<6xf32, #tpu.memory_space<smem>>
    %14 = arith.mulf %11, %11 : f32
    %cst_0 = arith.constant -5.000000e-01 : f32
    %15 = arith.divf %cst_0, %14 : f32
    %c0_1 = arith.constant 0 : index
    %c0_2 = arith.constant 0 : index
    %c0_3 = arith.constant 0 : index
    %16 = vector.load %arg1[%c0_1, %c0_2, %c0_3] : memref<2x16x3xf32, #tpu.memory_space<vmem>>, vector<1x16x3xf32>
    %17 = vector.shape_cast %16 : vector<1x16x3xf32> to vector<16x3xf32>
    %18 = arith.mulf %17, %17 : vector<16x3xf32>
    %cst_4 = arith.constant dense<0.000000e+00> : vector<16x16xf32>
    %19 = tpu.matmul %17, %17, %cst_4 {dimension_numbers = #tpu.dot_dimension_numbers<[1], [1], [0], [0], [0, 0, 1, 0], [], []>} : vector<16x3xf32>, vector<16x3xf32>, vector<16x16xf32> -> vector<16x16xf32>
    %cst_5 = arith.constant dense<0.000000e+00> : vector<1x16xf32>
    %20 = tpu.matmul %10, %18, %cst_5 {dimension_numbers = #tpu.dot_dimension_numbers<[1], [1], [0], [0], [0, 0, 1, 0], [], []>} : vector<1x3xf32>, vector<16x3xf32>, vector<1x16xf32> -> vector<1x16xf32>
    %cst_6 = arith.constant dense<0.000000e+00> : vector<16xf32>
    %21 = vector.multi_reduction <add>, %18, %cst_6 [1] : vector<16x3xf32> to vector<16xf32>
    %22 = vector.shape_cast %21 : vector<16xf32> to vector<16x1xf32>
    %23 = vector.broadcast %22 : vector<16x1xf32> to vector<16x16xf32>
    %24 = vector.broadcast %20 : vector<1x16xf32> to vector<16x16xf32>
    %25 = arith.addf %23, %24 : vector<16x16xf32>
    %cst_7 = arith.constant 2.000000e+00 : f32
    %26 = vector.broadcast %cst_7 : f32 to vector<16x16xf32>
    %27 = arith.mulf %26, %19 : vector<16x16xf32>
    %28 = arith.subf %25, %27 : vector<16x16xf32>
    %cst_8 = arith.constant 0.000000e+00 : f32
    %29 = vector.broadcast %cst_8 : f32 to vector<16x16xf32>
    %30 = arith.maximumf %28, %29 : vector<16x16xf32>
    %31 = vector.broadcast %15 : f32 to vector<16x16xf32>
    %32 = arith.mulf %31, %30 : vector<16x16xf32>
    %33 = math.exp %32 : vector<16x16xf32>
    %34 = vector.broadcast %12 : f32 to vector<16x16xf32>
    %35 = arith.mulf %34, %33 : vector<16x16xf32>
    %36 = vector.extract_strided_slice %35 {offsets = [0, 0], sizes = [8, 8], strides = [1, 1]} : vector<16x16xf32> to vector<8x8xf32>
    %cst_9 = arith.constant 1.000000e-03 : f32
    %37 = vector.broadcast %cst_9 : f32 to vector<8x8xf32>
    %38 = arith.mulf %37, %4 : vector<8x8xf32>
    %39 = arith.addf %36, %38 : vector<8x8xf32>
    %40 = vector.extract_strided_slice %35 {offsets = [0, 8], sizes = [8, 8], strides = [1, 1]} : vector<16x16xf32> to vector<8x8xf32>
    %41 = vector.extract_strided_slice %35 {offsets = [8, 8], sizes = [8, 8], strides = [1, 1]} : vector<16x16xf32> to vector<8x8xf32>
    %cst_10 = arith.constant 9.99999974E-5 : f32
    %42 = vector.broadcast %cst_10 : f32 to vector<8x8xf32>
    %43 = arith.mulf %42, %9 : vector<8x8xf32>
    %44 = arith.addf %41, %43 : vector<8x8xf32>
    %45 = vector.extract_strided_slice %39 {offsets = [0, 0], sizes = [1, 1], strides = [1, 1]} : vector<8x8xf32> to vector<1x1xf32>
    %46 = math.rsqrt %45 : vector<1x1xf32>
    %47 = vector.extract_strided_slice %39 {offsets = [0, 0], sizes = [8, 1], strides = [1, 1]} : vector<8x8xf32> to vector<8x1xf32>
    %48 = vector.broadcast %46 : vector<1x1xf32> to vector<8x1xf32>
    %49 = arith.mulf %47, %48 : vector<8x1xf32>
    %50 = vector.extract_strided_slice %39 {offsets = [0, 0], sizes = [1, 8], strides = [1, 1]} : vector<8x8xf32> to vector<1x8xf32>
    %51 = vector.broadcast %46 : vector<1x1xf32> to vector<1x8xf32>
    %52 = arith.mulf %50, %51 : vector<1x8xf32>
    %53 = vector.extract_strided_slice %40 {offsets = [0, 0], sizes = [1, 8], strides = [1, 1]} : vector<8x8xf32> to vector<1x8xf32>
    %54 = vector.broadcast %46 : vector<1x1xf32> to vector<1x8xf32>
    %55 = arith.mulf %53, %54 : vector<1x8xf32>
    %c0_11 = arith.constant 0 : index
    %c0_12 = arith.constant 0 : index
    %56 = vector.load %arg6[%c0_11, %c0_12] : memref<8x8xf32, #tpu.memory_space<vmem>>, vector<1x8xf32>
    tpu.vector_store %arg6[%c0_11, %c0_12], %55 {strides = array<i32>} : memref<8x8xf32, #tpu.memory_space<vmem>>, vector<1x8xf32>,
    %57 = vector.broadcast %49 : vector<8x1xf32> to vector<8x8xf32>
    %58 = vector.broadcast %52 : vector<1x8xf32> to vector<8x8xf32>
    %59 = arith.mulf %57, %58 : vector<8x8xf32>
    %60 = arith.subf %39, %59 : vector<8x8xf32>
    %61 = vector.broadcast %49 : vector<8x1xf32> to vector<8x8xf32>
    %62 = vector.broadcast %55 : vector<1x8xf32> to vector<8x8xf32>
    %63 = arith.mulf %61, %62 : vector<8x8xf32>
    %64 = arith.subf %40, %63 : vector<8x8xf32>
    %65 = vector.extract_strided_slice %60 {offsets = [1, 1], sizes = [1, 1], strides = [1, 1]} : vector<8x8xf32> to vector<1x1xf32>
    %66 = math.rsqrt %65 : vector<1x1xf32>
    %67 = vector.extract_strided_slice %60 {offsets = [0, 1], sizes = [8, 1], strides = [1, 1]} : vector<8x8xf32> to vector<8x1xf32>
    %68 = vector.broadcast %66 : vector<1x1xf32> to vector<8x1xf32>
    %69 = arith.mulf %67, %68 : vector<8x1xf32>
    %70 = vector.extract_strided_slice %60 {offsets = [1, 0], sizes = [1, 8], strides = [1, 1]} : vector<8x8xf32> to vector<1x8xf32>
    %71 = vector.broadcast %66 : vector<1x1xf32> to vector<1x8xf32>
    %72 = arith.mulf %70, %71 : vector<1x8xf32>
    %73 = vector.extract_strided_slice %64 {offsets = [1, 0], sizes = [1, 8], strides = [1, 1]} : vector<8x8xf32> to vector<1x8xf32>
    %74 = vector.broadcast %66 : vector<1x1xf32> to vector<1x8xf32>
    %75 = arith.mulf %73, %74 : vector<1x8xf32>
    %c1 = arith.constant 1 : index
    %c0_13 = arith.constant 0 : index
    %76 = vector.load %arg6[%c1, %c0_13] : memref<8x8xf32, #tpu.memory_space<vmem>>, vector<1x8xf32>
    tpu.vector_store %arg6[%c1, %c0_13], %75 {strides = array<i32>} : memref<8x8xf32, #tpu.memory_space<vmem>>, vector<1x8xf32>,
    %77 = vector.broadcast %69 : vector<8x1xf32> to vector<8x8xf32>
    %78 = vector.broadcast %72 : vector<1x8xf32> to vector<8x8xf32>
    %79 = arith.mulf %77, %78 : vector<8x8xf32>
    %80 = arith.subf %60, %79 : vector<8x8xf32>
    %81 = vector.broadcast %69 : vector<8x1xf32> to vector<8x8xf32>
    %82 = vector.broadcast %75 : vector<1x8xf32> to vector<8x8xf32>
    %83 = arith.mulf %81, %82 : vector<8x8xf32>
    %84 = arith.subf %64, %83 : vector<8x8xf32>
    %85 = vector.extract_strided_slice %80 {offsets = [2, 2], sizes = [1, 1], strides = [1, 1]} : vector<8x8xf32> to vector<1x1xf32>
    %86 = math.rsqrt %85 : vector<1x1xf32>
    %87 = vector.extract_strided_slice %80 {offsets = [0, 2], sizes = [8, 1], strides = [1, 1]} : vector<8x8xf32> to vector<8x1xf32>
    %88 = vector.broadcast %86 : vector<1x1xf32> to vector<8x1xf32>
    %89 = arith.mulf %87, %88 : vector<8x1xf32>
    %90 = vector.extract_strided_slice %80 {offsets = [2, 0], sizes = [1, 8], strides = [1, 1]} : vector<8x8xf32> to vector<1x8xf32>
    %91 = vector.broadcast %86 : vector<1x1xf32> to vector<1x8xf32>
    %92 = arith.mulf %90, %91 : vector<1x8xf32>
    %93 = vector.extract_strided_slice %84 {offsets = [2, 0], sizes = [1, 8], strides = [1, 1]} : vector<8x8xf32> to vector<1x8xf32>
    %94 = vector.broadcast %86 : vector<1x1xf32> to vector<1x8xf32>
    %95 = arith.mulf %93, %94 : vector<1x8xf32>
    %c2_14 = arith.constant 2 : index
    %c0_15 = arith.constant 0 : index
    %96 = vector.load %arg6[%c2_14, %c0_15] : memref<8x8xf32, #tpu.memory_space<vmem>>, vector<1x8xf32>
    tpu.vector_store %arg6[%c2_14, %c0_15], %95 {strides = array<i32>} : memref<8x8xf32, #tpu.memory_space<vmem>>, vector<1x8xf32>,
    %97 = vector.broadcast %89 : vector<8x1xf32> to vector<8x8xf32>
    %98 = vector.broadcast %92 : vector<1x8xf32> to vector<8x8xf32>
    %99 = arith.mulf %97, %98 : vector<8x8xf32>
    %100 = arith.subf %80, %99 : vector<8x8xf32>
    %101 = vector.broadcast %89 : vector<8x1xf32> to vector<8x8xf32>
    %102 = vector.broadcast %95 : vector<1x8xf32> to vector<8x8xf32>
    %103 = arith.mulf %101, %102 : vector<8x8xf32>
    %104 = arith.subf %84, %103 : vector<8x8xf32>
    %105 = vector.extract_strided_slice %100 {offsets = [3, 3], sizes = [1, 1], strides = [1, 1]} : vector<8x8xf32> to vector<1x1xf32>
    %106 = math.rsqrt %105 : vector<1x1xf32>
    %107 = vector.extract_strided_slice %100 {offsets = [0, 3], sizes = [8, 1], strides = [1, 1]} : vector<8x8xf32> to vector<8x1xf32>
    %108 = vector.broadcast %106 : vector<1x1xf32> to vector<8x1xf32>
    %109 = arith.mulf %107, %108 : vector<8x1xf32>
    %110 = vector.extract_strided_slice %100 {offsets = [3, 0], sizes = [1, 8], strides = [1, 1]} : vector<8x8xf32> to vector<1x8xf32>
    %111 = vector.broadcast %106 : vector<1x1xf32> to vector<1x8xf32>
    %112 = arith.mulf %110, %111 : vector<1x8xf32>
    %113 = vector.extract_strided_slice %104 {offsets = [3, 0], sizes = [1, 8], strides = [1, 1]} : vector<8x8xf32> to vector<1x8xf32>
    %114 = vector.broadcast %106 : vector<1x1xf32> to vector<1x8xf32>
    %115 = arith.mulf %113, %114 : vector<1x8xf32>
    %c3 = arith.constant 3 : index
    %c0_16 = arith.constant 0 : index
    %116 = vector.load %arg6[%c3, %c0_16] : memref<8x8xf32, #tpu.memory_space<vmem>>, vector<1x8xf32>
    tpu.vector_store %arg6[%c3, %c0_16], %115 {strides = array<i32>} : memref<8x8xf32, #tpu.memory_space<vmem>>, vector<1x8xf32>,
    %117 = vector.broadcast %109 : vector<8x1xf32> to vector<8x8xf32>
    %118 = vector.broadcast %112 : vector<1x8xf32> to vector<8x8xf32>
    %119 = arith.mulf %117, %118 : vector<8x8xf32>
    %120 = arith.subf %100, %119 : vector<8x8xf32>
    %121 = vector.broadcast %109 : vector<8x1xf32> to vector<8x8xf32>
    %122 = vector.broadcast %115 : vector<1x8xf32> to vector<8x8xf32>
    %123 = arith.mulf %121, %122 : vector<8x8xf32>
    %124 = arith.subf %104, %123 : vector<8x8xf32>
    %125 = vector.extract_strided_slice %120 {offsets = [4, 4], sizes = [1, 1], strides = [1, 1]} : vector<8x8xf32> to vector<1x1xf32>
    %126 = math.rsqrt %125 : vector<1x1xf32>
    %127 = vector.extract_strided_slice %120 {offsets = [0, 4], sizes = [8, 1], strides = [1, 1]} : vector<8x8xf32> to vector<8x1xf32>
    %128 = vector.broadcast %126 : vector<1x1xf32> to vector<8x1xf32>
    %129 = arith.mulf %127, %128 : vector<8x1xf32>
    %130 = vector.extract_strided_slice %120 {offsets = [4, 0], sizes = [1, 8], strides = [1, 1]} : vector<8x8xf32> to vector<1x8xf32>
    %131 = vector.broadcast %126 : vector<1x1xf32> to vector<1x8xf32>
    %132 = arith.mulf %130, %131 : vector<1x8xf32>
    %133 = vector.extract_strided_slice %124 {offsets = [4, 0], sizes = [1, 8], strides = [1, 1]} : vector<8x8xf32> to vector<1x8xf32>
    %134 = vector.broadcast %126 : vector<1x1xf32> to vector<1x8xf32>
    %135 = arith.mulf %133, %134 : vector<1x8xf32>
    %c4_17 = arith.constant 4 : index
    %c0_18 = arith.constant 0 : index
    %136 = vector.load %arg6[%c4_17, %c0_18] : memref<8x8xf32, #tpu.memory_space<vmem>>, vector<1x8xf32>
    tpu.vector_store %arg6[%c4_17, %c0_18], %135 {strides = array<i32>} : memref<8x8xf32, #tpu.memory_space<vmem>>, vector<1x8xf32>,
    %137 = vector.broadcast %129 : vector<8x1xf32> to vector<8x8xf32>
    %138 = vector.broadcast %132 : vector<1x8xf32> to vector<8x8xf32>
    %139 = arith.mulf %137, %138 : vector<8x8xf32>
    %140 = arith.subf %120, %139 : vector<8x8xf32>
    %141 = vector.broadcast %129 : vector<8x1xf32> to vector<8x8xf32>
    %142 = vector.broadcast %135 : vector<1x8xf32> to vector<8x8xf32>
    %143 = arith.mulf %141, %142 : vector<8x8xf32>
    %144 = arith.subf %124, %143 : vector<8x8xf32>
    %145 = vector.extract_strided_slice %140 {offsets = [5, 5], sizes = [1, 1], strides = [1, 1]} : vector<8x8xf32> to vector<1x1xf32>
    %146 = math.rsqrt %145 : vector<1x1xf32>
    %147 = vector.extract_strided_slice %140 {offsets = [0, 5], sizes = [8, 1], strides = [1, 1]} : vector<8x8xf32> to vector<8x1xf32>
    %148 = vector.broadcast %146 : vector<1x1xf32> to vector<8x1xf32>
    %149 = arith.mulf %147, %148 : vector<8x1xf32>
    %150 = vector.extract_strided_slice %140 {offsets = [5, 0], sizes = [1, 8], strides = [1, 1]} : vector<8x8xf32> to vector<1x8xf32>
    %151 = vector.broadcast %146 : vector<1x1xf32> to vector<1x8xf32>
    %152 = arith.mulf %150, %151 : vector<1x8xf32>
    %153 = vector.extract_strided_slice %144 {offsets = [5, 0], sizes = [1, 8], strides = [1, 1]} : vector<8x8xf32> to vector<1x8xf32>
    %154 = vector.broadcast %146 : vector<1x1xf32> to vector<1x8xf32>
    %155 = arith.mulf %153, %154 : vector<1x8xf32>
    %c5 = arith.constant 5 : index
    %c0_19 = arith.constant 0 : index
    %156 = vector.load %arg6[%c5, %c0_19] : memref<8x8xf32, #tpu.memory_space<vmem>>, vector<1x8xf32>
    tpu.vector_store %arg6[%c5, %c0_19], %155 {strides = array<i32>} : memref<8x8xf32, #tpu.memory_space<vmem>>, vector<1x8xf32>,
    %157 = vector.broadcast %149 : vector<8x1xf32> to vector<8x8xf32>
    %158 = vector.broadcast %152 : vector<1x8xf32> to vector<8x8xf32>
    %159 = arith.mulf %157, %158 : vector<8x8xf32>
    %160 = arith.subf %140, %159 : vector<8x8xf32>
    %161 = vector.broadcast %149 : vector<8x1xf32> to vector<8x8xf32>
    %162 = vector.broadcast %155 : vector<1x8xf32> to vector<8x8xf32>
    %163 = arith.mulf %161, %162 : vector<8x8xf32>
    %164 = arith.subf %144, %163 : vector<8x8xf32>
    %165 = vector.extract_strided_slice %160 {offsets = [6, 6], sizes = [1, 1], strides = [1, 1]} : vector<8x8xf32> to vector<1x1xf32>
    %166 = math.rsqrt %165 : vector<1x1xf32>
    %167 = vector.extract_strided_slice %160 {offsets = [0, 6], sizes = [8, 1], strides = [1, 1]} : vector<8x8xf32> to vector<8x1xf32>
    %168 = vector.broadcast %166 : vector<1x1xf32> to vector<8x1xf32>
    %169 = arith.mulf %167, %168 : vector<8x1xf32>
    %170 = vector.extract_strided_slice %160 {offsets = [6, 0], sizes = [1, 8], strides = [1, 1]} : vector<8x8xf32> to vector<1x8xf32>
    %171 = vector.broadcast %166 : vector<1x1xf32> to vector<1x8xf32>
    %172 = arith.mulf %170, %171 : vector<1x8xf32>
    %173 = vector.extract_strided_slice %164 {offsets = [6, 0], sizes = [1, 8], strides = [1, 1]} : vector<8x8xf32> to vector<1x8xf32>
    %174 = vector.broadcast %166 : vector<1x1xf32> to vector<1x8xf32>
    %175 = arith.mulf %173, %174 : vector<1x8xf32>
    %c6 = arith.constant 6 : index
    %c0_20 = arith.constant 0 : index
    %176 = vector.load %arg6[%c6, %c0_20] : memref<8x8xf32, #tpu.memory_space<vmem>>, vector<1x8xf32>
    tpu.vector_store %arg6[%c6, %c0_20], %175 {strides = array<i32>} : memref<8x8xf32, #tpu.memory_space<vmem>>, vector<1x8xf32>,
    %177 = vector.broadcast %169 : vector<8x1xf32> to vector<8x8xf32>
    %178 = vector.broadcast %172 : vector<1x8xf32> to vector<8x8xf32>
    %179 = arith.mulf %177, %178 : vector<8x8xf32>
    %180 = arith.subf %160, %179 : vector<8x8xf32>
    %181 = vector.broadcast %169 : vector<8x1xf32> to vector<8x8xf32>
    %182 = vector.broadcast %175 : vector<1x8xf32> to vector<8x8xf32>
    %183 = arith.mulf %181, %182 : vector<8x8xf32>
    %184 = arith.subf %164, %183 : vector<8x8xf32>
    %185 = vector.extract_strided_slice %180 {offsets = [7, 7], sizes = [1, 1], strides = [1, 1]} : vector<8x8xf32> to vector<1x1xf32>
    %186 = math.rsqrt %185 : vector<1x1xf32>
    %187 = vector.extract_strided_slice %184 {offsets = [7, 0], sizes = [1, 8], strides = [1, 1]} : vector<8x8xf32> to vector<1x8xf32>
    %188 = vector.broadcast %186 : vector<1x1xf32> to vector<1x8xf32>
    %189 = arith.mulf %187, %188 : vector<1x8xf32>
    %c7 = arith.constant 7 : index
    %c0_21 = arith.constant 0 : index
    %190 = vector.load %arg6[%c7, %c0_21] : memref<8x8xf32, #tpu.memory_space<vmem>>, vector<1x8xf32>
    tpu.vector_store %arg6[%c7, %c0_21], %189 {strides = array<i32>} : memref<8x8xf32, #tpu.memory_space<vmem>>, vector<1x8xf32>,
    %c0_22 = arith.constant 0 : index
    %c0_23 = arith.constant 0 : index
    %191 = vector.load %arg6[%c0_22, %c0_23] : memref<8x8xf32, #tpu.memory_space<vmem>>, vector<8x8xf32>
    %c0_24 = arith.constant 0 : index
    %c0_25 = arith.constant 0 : index
    %c0_26 = arith.constant 0 : index
    %192 = vector.load %arg2[%c0_24, %c0_25, %c0_26] : memref<2x1x8xf32, #tpu.memory_space<vmem>>, vector<1x1x8xf32>
    %193 = vector.shape_cast %192 : vector<1x1x8xf32> to vector<1x8xf32>
    %cst_27 = arith.constant dense<0.000000e+00> : vector<1x8xf32>
    %194 = tpu.matmul %193, %191, %cst_27 {dimension_numbers = #tpu.dot_dimension_numbers<[1], [0], [0], [1], [0, 0, 1, 1], [], []>} : vector<1x8xf32>, vector<8x8xf32>, vector<1x8xf32> -> vector<1x8xf32>
    %195 = vector.broadcast %13 : f32 to vector<1x8xf32>
    %196 = arith.addf %194, %195 : vector<1x8xf32>
    %c0_28 = arith.constant 0 : index
    %c0_29 = arith.constant 0 : index
    %c0_30 = arith.constant 0 : index
    %197 = vector.load %arg4[%c0_28, %c0_29, %c0_30] : memref<2x1x8xf32, #tpu.memory_space<vmem>>, vector<1x1x8xf32>
    %198 = vector.shape_cast %197 : vector<1x1x8xf32> to vector<1x8xf32>
    %199 = vector.shape_cast %196 : vector<1x8xf32> to vector<1x1x8xf32>
    tpu.vector_store %arg4[%c0_28, %c0_29, %c0_30], %199 {strides = array<i32>} : memref<2x1x8xf32, #tpu.memory_space<vmem>>, vector<1x1x8xf32>,
    %c0_31 = arith.constant 0 : index
    %c0_32 = arith.constant 0 : index
    %c0_33 = arith.constant 0 : index
    %200 = vector.load %arg3[%c0_31, %c0_32, %c0_33] : memref<2x8x8xf32, #tpu.memory_space<vmem>>, vector<1x8x8xf32>
    %201 = vector.shape_cast %200 : vector<1x8x8xf32> to vector<8x8xf32>
    %cst_34 = arith.constant dense<0.000000e+00> : vector<8x8xf32>
    %202 = tpu.matmul %201, %191, %cst_34 {dimension_numbers = #tpu.dot_dimension_numbers<[1], [0], [0], [1], [0, 0, 1, 1], [], []>} : vector<8x8xf32>, vector<8x8xf32>, vector<8x8xf32> -> vector<8x8xf32>
    %cst_35 = arith.constant dense<0.000000e+00> : vector<8x8xf32>
    %203 = tpu.matmul %191, %202, %cst_35 {dimension_numbers = #tpu.dot_dimension_numbers<[0], [0], [1], [1], [0, 1, 1, 1], [], []>} : vector<8x8xf32>, vector<8x8xf32>, vector<8x8xf32> -> vector<8x8xf32>
    %204 = arith.addf %44, %203 : vector<8x8xf32>
    %c0_36 = arith.constant 0 : index
    %c0_37 = arith.constant 0 : index
    %c0_38 = arith.constant 0 : index
    %205 = vector.load %arg5[%c0_36, %c0_37, %c0_38] : memref<2x8x8xf32, #tpu.memory_space<vmem>>, vector<1x8x8xf32>
    %206 = vector.shape_cast %205 : vector<1x8x8xf32> to vector<8x8xf32>
    %207 = vector.shape_cast %204 : vector<8x8xf32> to vector<1x8x8xf32>
    tpu.vector_store %arg5[%c0_36, %c0_37, %c0_38], %207 {strides = array<i32>} : memref<2x8x8xf32, #tpu.memory_space<vmem>>, vector<1x8x8xf32>,
    %c1_39 = arith.constant 1 : index
    %208 = memref.load %arg0[%c1_39] : memref<6xf32, #tpu.memory_space<smem>>
    %c3_40 = arith.constant 3 : index
    %209 = memref.load %arg0[%c3_40] : memref<6xf32, #tpu.memory_space<smem>>
    %c5_41 = arith.constant 5 : index
    %210 = memref.load %arg0[%c5_41] : memref<6xf32, #tpu.memory_space<smem>>
    %211 = arith.mulf %208, %208 : f32
    %cst_42 = arith.constant -5.000000e-01 : f32
    %212 = arith.divf %cst_42, %211 : f32
    %c1_43 = arith.constant 1 : index
    %c0_44 = arith.constant 0 : index
    %c0_45 = arith.constant 0 : index
    %213 = vector.load %arg1[%c1_43, %c0_44, %c0_45] : memref<2x16x3xf32, #tpu.memory_space<vmem>>, vector<1x16x3xf32>
    %214 = vector.shape_cast %213 : vector<1x16x3xf32> to vector<16x3xf32>
    %215 = arith.mulf %214, %214 : vector<16x3xf32>
    %cst_46 = arith.constant dense<0.000000e+00> : vector<16x16xf32>
    %216 = tpu.matmul %214, %214, %cst_46 {dimension_numbers = #tpu.dot_dimension_numbers<[1], [1], [0], [0], [0, 0, 1, 0], [], []>} : vector<16x3xf32>, vector<16x3xf32>, vector<16x16xf32> -> vector<16x16xf32>
    %cst_47 = arith.constant dense<0.000000e+00> : vector<1x16xf32>
    %217 = tpu.matmul %10, %215, %cst_47 {dimension_numbers = #tpu.dot_dimension_numbers<[1], [1], [0], [0], [0, 0, 1, 0], [], []>} : vector<1x3xf32>, vector<16x3xf32>, vector<1x16xf32> -> vector<1x16xf32>
    %cst_48 = arith.constant dense<0.000000e+00> : vector<16xf32>
    %218 = vector.multi_reduction <add>, %215, %cst_48 [1] : vector<16x3xf32> to vector<16xf32>
    %219 = vector.shape_cast %218 : vector<16xf32> to vector<16x1xf32>
    %220 = vector.broadcast %219 : vector<16x1xf32> to vector<16x16xf32>
    %221 = vector.broadcast %217 : vector<1x16xf32> to vector<16x16xf32>
    %222 = arith.addf %220, %221 : vector<16x16xf32>
    %cst_49 = arith.constant 2.000000e+00 : f32
    %223 = vector.broadcast %cst_49 : f32 to vector<16x16xf32>
    %224 = arith.mulf %223, %216 : vector<16x16xf32>
    %225 = arith.subf %222, %224 : vector<16x16xf32>
    %cst_50 = arith.constant 0.000000e+00 : f32
    %226 = vector.broadcast %cst_50 : f32 to vector<16x16xf32>
    %227 = arith.maximumf %225, %226 : vector<16x16xf32>
    %228 = vector.broadcast %212 : f32 to vector<16x16xf32>
    %229 = arith.mulf %228, %227 : vector<16x16xf32>
    %230 = math.exp %229 : vector<16x16xf32>
    %231 = vector.broadcast %209 : f32 to vector<16x16xf32>
    %232 = arith.mulf %231, %230 : vector<16x16xf32>
    %233 = vector.extract_strided_slice %232 {offsets = [0, 0], sizes = [8, 8], strides = [1, 1]} : vector<16x16xf32> to vector<8x8xf32>
    %cst_51 = arith.constant 1.000000e-03 : f32
    %234 = vector.broadcast %cst_51 : f32 to vector<8x8xf32>
    %235 = arith.mulf %234, %4 : vector<8x8xf32>
    %236 = arith.addf %233, %235 : vector<8x8xf32>
    %237 = vector.extract_strided_slice %232 {offsets = [0, 8], sizes = [8, 8], strides = [1, 1]} : vector<16x16xf32> to vector<8x8xf32>
    %238 = vector.extract_strided_slice %232 {offsets = [8, 8], sizes = [8, 8], strides = [1, 1]} : vector<16x16xf32> to vector<8x8xf32>
    %cst_52 = arith.constant 9.99999974E-5 : f32
    %239 = vector.broadcast %cst_52 : f32 to vector<8x8xf32>
    %240 = arith.mulf %239, %9 : vector<8x8xf32>
    %241 = arith.addf %238, %240 : vector<8x8xf32>
    %242 = vector.extract_strided_slice %236 {offsets = [0, 0], sizes = [1, 1], strides = [1, 1]} : vector<8x8xf32> to vector<1x1xf32>
    %243 = math.rsqrt %242 : vector<1x1xf32>
    %244 = vector.extract_strided_slice %236 {offsets = [0, 0], sizes = [8, 1], strides = [1, 1]} : vector<8x8xf32> to vector<8x1xf32>
    %245 = vector.broadcast %243 : vector<1x1xf32> to vector<8x1xf32>
    %246 = arith.mulf %244, %245 : vector<8x1xf32>
    %247 = vector.extract_strided_slice %236 {offsets = [0, 0], sizes = [1, 8], strides = [1, 1]} : vector<8x8xf32> to vector<1x8xf32>
    %248 = vector.broadcast %243 : vector<1x1xf32> to vector<1x8xf32>
    %249 = arith.mulf %247, %248 : vector<1x8xf32>
    %250 = vector.extract_strided_slice %237 {offsets = [0, 0], sizes = [1, 8], strides = [1, 1]} : vector<8x8xf32> to vector<1x8xf32>
    %251 = vector.broadcast %243 : vector<1x1xf32> to vector<1x8xf32>
    %252 = arith.mulf %250, %251 : vector<1x8xf32>
    %c0_53 = arith.constant 0 : index
    %c0_54 = arith.constant 0 : index
    %253 = vector.load %arg6[%c0_53, %c0_54] : memref<8x8xf32, #tpu.memory_space<vmem>>, vector<1x8xf32>
    tpu.vector_store %arg6[%c0_53, %c0_54], %252 {strides = array<i32>} : memref<8x8xf32, #tpu.memory_space<vmem>>, vector<1x8xf32>,
    %254 = vector.broadcast %246 : vector<8x1xf32> to vector<8x8xf32>
    %255 = vector.broadcast %249 : vector<1x8xf32> to vector<8x8xf32>
    %256 = arith.mulf %254, %255 : vector<8x8xf32>
    %257 = arith.subf %236, %256 : vector<8x8xf32>
    %258 = vector.broadcast %246 : vector<8x1xf32> to vector<8x8xf32>
    %259 = vector.broadcast %252 : vector<1x8xf32> to vector<8x8xf32>
    %260 = arith.mulf %258, %259 : vector<8x8xf32>
    %261 = arith.subf %237, %260 : vector<8x8xf32>
    %262 = vector.extract_strided_slice %257 {offsets = [1, 1], sizes = [1, 1], strides = [1, 1]} : vector<8x8xf32> to vector<1x1xf32>
    %263 = math.rsqrt %262 : vector<1x1xf32>
    %264 = vector.extract_strided_slice %257 {offsets = [0, 1], sizes = [8, 1], strides = [1, 1]} : vector<8x8xf32> to vector<8x1xf32>
    %265 = vector.broadcast %263 : vector<1x1xf32> to vector<8x1xf32>
    %266 = arith.mulf %264, %265 : vector<8x1xf32>
    %267 = vector.extract_strided_slice %257 {offsets = [1, 0], sizes = [1, 8], strides = [1, 1]} : vector<8x8xf32> to vector<1x8xf32>
    %268 = vector.broadcast %263 : vector<1x1xf32> to vector<1x8xf32>
    %269 = arith.mulf %267, %268 : vector<1x8xf32>
    %270 = vector.extract_strided_slice %261 {offsets = [1, 0], sizes = [1, 8], strides = [1, 1]} : vector<8x8xf32> to vector<1x8xf32>
    %271 = vector.broadcast %263 : vector<1x1xf32> to vector<1x8xf32>
    %272 = arith.mulf %270, %271 : vector<1x8xf32>
    %c1_55 = arith.constant 1 : index
    %c0_56 = arith.constant 0 : index
    %273 = vector.load %arg6[%c1_55, %c0_56] : memref<8x8xf32, #tpu.memory_space<vmem>>, vector<1x8xf32>
    tpu.vector_store %arg6[%c1_55, %c0_56], %272 {strides = array<i32>} : memref<8x8xf32, #tpu.memory_space<vmem>>, vector<1x8xf32>,
    %274 = vector.broadcast %266 : vector<8x1xf32> to vector<8x8xf32>
    %275 = vector.broadcast %269 : vector<1x8xf32> to vector<8x8xf32>
    %276 = arith.mulf %274, %275 : vector<8x8xf32>
    %277 = arith.subf %257, %276 : vector<8x8xf32>
    %278 = vector.broadcast %266 : vector<8x1xf32> to vector<8x8xf32>
    %279 = vector.broadcast %272 : vector<1x8xf32> to vector<8x8xf32>
    %280 = arith.mulf %278, %279 : vector<8x8xf32>
    %281 = arith.subf %261, %280 : vector<8x8xf32>
    %282 = vector.extract_strided_slice %277 {offsets = [2, 2], sizes = [1, 1], strides = [1, 1]} : vector<8x8xf32> to vector<1x1xf32>
    %283 = math.rsqrt %282 : vector<1x1xf32>
    %284 = vector.extract_strided_slice %277 {offsets = [0, 2], sizes = [8, 1], strides = [1, 1]} : vector<8x8xf32> to vector<8x1xf32>
    %285 = vector.broadcast %283 : vector<1x1xf32> to vector<8x1xf32>
    %286 = arith.mulf %284, %285 : vector<8x1xf32>
    %287 = vector.extract_strided_slice %277 {offsets = [2, 0], sizes = [1, 8], strides = [1, 1]} : vector<8x8xf32> to vector<1x8xf32>
    %288 = vector.broadcast %283 : vector<1x1xf32> to vector<1x8xf32>
    %289 = arith.mulf %287, %288 : vector<1x8xf32>
    %290 = vector.extract_strided_slice %281 {offsets = [2, 0], sizes = [1, 8], strides = [1, 1]} : vector<8x8xf32> to vector<1x8xf32>
    %291 = vector.broadcast %283 : vector<1x1xf32> to vector<1x8xf32>
    %292 = arith.mulf %290, %291 : vector<1x8xf32>
    %c2_57 = arith.constant 2 : index
    %c0_58 = arith.constant 0 : index
    %293 = vector.load %arg6[%c2_57, %c0_58] : memref<8x8xf32, #tpu.memory_space<vmem>>, vector<1x8xf32>
    tpu.vector_store %arg6[%c2_57, %c0_58], %292 {strides = array<i32>} : memref<8x8xf32, #tpu.memory_space<vmem>>, vector<1x8xf32>,
    %294 = vector.broadcast %286 : vector<8x1xf32> to vector<8x8xf32>
    %295 = vector.broadcast %289 : vector<1x8xf32> to vector<8x8xf32>
    %296 = arith.mulf %294, %295 : vector<8x8xf32>
    %297 = arith.subf %277, %296 : vector<8x8xf32>
    %298 = vector.broadcast %286 : vector<8x1xf32> to vector<8x8xf32>
    %299 = vector.broadcast %292 : vector<1x8xf32> to vector<8x8xf32>
    %300 = arith.mulf %298, %299 : vector<8x8xf32>
    %301 = arith.subf %281, %300 : vector<8x8xf32>
    %302 = vector.extract_strided_slice %297 {offsets = [3, 3], sizes = [1, 1], strides = [1, 1]} : vector<8x8xf32> to vector<1x1xf32>
    %303 = math.rsqrt %302 : vector<1x1xf32>
    %304 = vector.extract_strided_slice %297 {offsets = [0, 3], sizes = [8, 1], strides = [1, 1]} : vector<8x8xf32> to vector<8x1xf32>
    %305 = vector.broadcast %303 : vector<1x1xf32> to vector<8x1xf32>
    %306 = arith.mulf %304, %305 : vector<8x1xf32>
    %307 = vector.extract_strided_slice %297 {offsets = [3, 0], sizes = [1, 8], strides = [1, 1]} : vector<8x8xf32> to vector<1x8xf32>
    %308 = vector.broadcast %303 : vector<1x1xf32> to vector<1x8xf32>
    %309 = arith.mulf %307, %308 : vector<1x8xf32>
    %310 = vector.extract_strided_slice %301 {offsets = [3, 0], sizes = [1, 8], strides = [1, 1]} : vector<8x8xf32> to vector<1x8xf32>
    %311 = vector.broadcast %303 : vector<1x1xf32> to vector<1x8xf32>
    %312 = arith.mulf %310, %311 : vector<1x8xf32>
    %c3_59 = arith.constant 3 : index
    %c0_60 = arith.constant 0 : index
    %313 = vector.load %arg6[%c3_59, %c0_60] : memref<8x8xf32, #tpu.memory_space<vmem>>, vector<1x8xf32>
    tpu.vector_store %arg6[%c3_59, %c0_60], %312 {strides = array<i32>} : memref<8x8xf32, #tpu.memory_space<vmem>>, vector<1x8xf32>,
    %314 = vector.broadcast %306 : vector<8x1xf32> to vector<8x8xf32>
    %315 = vector.broadcast %309 : vector<1x8xf32> to vector<8x8xf32>
    %316 = arith.mulf %314, %315 : vector<8x8xf32>
    %317 = arith.subf %297, %316 : vector<8x8xf32>
    %318 = vector.broadcast %306 : vector<8x1xf32> to vector<8x8xf32>
    %319 = vector.broadcast %312 : vector<1x8xf32> to vector<8x8xf32>
    %320 = arith.mulf %318, %319 : vector<8x8xf32>
    %321 = arith.subf %301, %320 : vector<8x8xf32>
    %322 = vector.extract_strided_slice %317 {offsets = [4, 4], sizes = [1, 1], strides = [1, 1]} : vector<8x8xf32> to vector<1x1xf32>
    %323 = math.rsqrt %322 : vector<1x1xf32>
    %324 = vector.extract_strided_slice %317 {offsets = [0, 4], sizes = [8, 1], strides = [1, 1]} : vector<8x8xf32> to vector<8x1xf32>
    %325 = vector.broadcast %323 : vector<1x1xf32> to vector<8x1xf32>
    %326 = arith.mulf %324, %325 : vector<8x1xf32>
    %327 = vector.extract_strided_slice %317 {offsets = [4, 0], sizes = [1, 8], strides = [1, 1]} : vector<8x8xf32> to vector<1x8xf32>
    %328 = vector.broadcast %323 : vector<1x1xf32> to vector<1x8xf32>
    %329 = arith.mulf %327, %328 : vector<1x8xf32>
    %330 = vector.extract_strided_slice %321 {offsets = [4, 0], sizes = [1, 8], strides = [1, 1]} : vector<8x8xf32> to vector<1x8xf32>
    %331 = vector.broadcast %323 : vector<1x1xf32> to vector<1x8xf32>
    %332 = arith.mulf %330, %331 : vector<1x8xf32>
    %c4_61 = arith.constant 4 : index
    %c0_62 = arith.constant 0 : index
    %333 = vector.load %arg6[%c4_61, %c0_62] : memref<8x8xf32, #tpu.memory_space<vmem>>, vector<1x8xf32>
    tpu.vector_store %arg6[%c4_61, %c0_62], %332 {strides = array<i32>} : memref<8x8xf32, #tpu.memory_space<vmem>>, vector<1x8xf32>,
    %334 = vector.broadcast %326 : vector<8x1xf32> to vector<8x8xf32>
    %335 = vector.broadcast %329 : vector<1x8xf32> to vector<8x8xf32>
    %336 = arith.mulf %334, %335 : vector<8x8xf32>
    %337 = arith.subf %317, %336 : vector<8x8xf32>
    %338 = vector.broadcast %326 : vector<8x1xf32> to vector<8x8xf32>
    %339 = vector.broadcast %332 : vector<1x8xf32> to vector<8x8xf32>
    %340 = arith.mulf %338, %339 : vector<8x8xf32>
    %341 = arith.subf %321, %340 : vector<8x8xf32>
    %342 = vector.extract_strided_slice %337 {offsets = [5, 5], sizes = [1, 1], strides = [1, 1]} : vector<8x8xf32> to vector<1x1xf32>
    %343 = math.rsqrt %342 : vector<1x1xf32>
    %344 = vector.extract_strided_slice %337 {offsets = [0, 5], sizes = [8, 1], strides = [1, 1]} : vector<8x8xf32> to vector<8x1xf32>
    %345 = vector.broadcast %343 : vector<1x1xf32> to vector<8x1xf32>
    %346 = arith.mulf %344, %345 : vector<8x1xf32>
    %347 = vector.extract_strided_slice %337 {offsets = [5, 0], sizes = [1, 8], strides = [1, 1]} : vector<8x8xf32> to vector<1x8xf32>
    %348 = vector.broadcast %343 : vector<1x1xf32> to vector<1x8xf32>
    %349 = arith.mulf %347, %348 : vector<1x8xf32>
    %350 = vector.extract_strided_slice %341 {offsets = [5, 0], sizes = [1, 8], strides = [1, 1]} : vector<8x8xf32> to vector<1x8xf32>
    %351 = vector.broadcast %343 : vector<1x1xf32> to vector<1x8xf32>
    %352 = arith.mulf %350, %351 : vector<1x8xf32>
    %c5_63 = arith.constant 5 : index
    %c0_64 = arith.constant 0 : index
    %353 = vector.load %arg6[%c5_63, %c0_64] : memref<8x8xf32, #tpu.memory_space<vmem>>, vector<1x8xf32>
    tpu.vector_store %arg6[%c5_63, %c0_64], %352 {strides = array<i32>} : memref<8x8xf32, #tpu.memory_space<vmem>>, vector<1x8xf32>,
    %354 = vector.broadcast %346 : vector<8x1xf32> to vector<8x8xf32>
    %355 = vector.broadcast %349 : vector<1x8xf32> to vector<8x8xf32>
    %356 = arith.mulf %354, %355 : vector<8x8xf32>
    %357 = arith.subf %337, %356 : vector<8x8xf32>
    %358 = vector.broadcast %346 : vector<8x1xf32> to vector<8x8xf32>
    %359 = vector.broadcast %352 : vector<1x8xf32> to vector<8x8xf32>
    %360 = arith.mulf %358, %359 : vector<8x8xf32>
    %361 = arith.subf %341, %360 : vector<8x8xf32>
    %362 = vector.extract_strided_slice %357 {offsets = [6, 6], sizes = [1, 1], strides = [1, 1]} : vector<8x8xf32> to vector<1x1xf32>
    %363 = math.rsqrt %362 : vector<1x1xf32>
    %364 = vector.extract_strided_slice %357 {offsets = [0, 6], sizes = [8, 1], strides = [1, 1]} : vector<8x8xf32> to vector<8x1xf32>
    %365 = vector.broadcast %363 : vector<1x1xf32> to vector<8x1xf32>
    %366 = arith.mulf %364, %365 : vector<8x1xf32>
    %367 = vector.extract_strided_slice %357 {offsets = [6, 0], sizes = [1, 8], strides = [1, 1]} : vector<8x8xf32> to vector<1x8xf32>
    %368 = vector.broadcast %363 : vector<1x1xf32> to vector<1x8xf32>
    %369 = arith.mulf %367, %368 : vector<1x8xf32>
    %370 = vector.extract_strided_slice %361 {offsets = [6, 0], sizes = [1, 8], strides = [1, 1]} : vector<8x8xf32> to vector<1x8xf32>
    %371 = vector.broadcast %363 : vector<1x1xf32> to vector<1x8xf32>
    %372 = arith.mulf %370, %371 : vector<1x8xf32>
    %c6_65 = arith.constant 6 : index
    %c0_66 = arith.constant 0 : index
    %373 = vector.load %arg6[%c6_65, %c0_66] : memref<8x8xf32, #tpu.memory_space<vmem>>, vector<1x8xf32>
    tpu.vector_store %arg6[%c6_65, %c0_66], %372 {strides = array<i32>} : memref<8x8xf32, #tpu.memory_space<vmem>>, vector<1x8xf32>,
    %374 = vector.broadcast %366 : vector<8x1xf32> to vector<8x8xf32>
    %375 = vector.broadcast %369 : vector<1x8xf32> to vector<8x8xf32>
    %376 = arith.mulf %374, %375 : vector<8x8xf32>
    %377 = arith.subf %357, %376 : vector<8x8xf32>
    %378 = vector.broadcast %366 : vector<8x1xf32> to vector<8x8xf32>
    %379 = vector.broadcast %372 : vector<1x8xf32> to vector<8x8xf32>
    %380 = arith.mulf %378, %379 : vector<8x8xf32>
    %381 = arith.subf %361, %380 : vector<8x8xf32>
    %382 = vector.extract_strided_slice %377 {offsets = [7, 7], sizes = [1, 1], strides = [1, 1]} : vector<8x8xf32> to vector<1x1xf32>
    %383 = math.rsqrt %382 : vector<1x1xf32>
    %384 = vector.extract_strided_slice %381 {offsets = [7, 0], sizes = [1, 8], strides = [1, 1]} : vector<8x8xf32> to vector<1x8xf32>
    %385 = vector.broadcast %383 : vector<1x1xf32> to vector<1x8xf32>
    %386 = arith.mulf %384, %385 : vector<1x8xf32>
    %c7_67 = arith.constant 7 : index
    %c0_68 = arith.constant 0 : index
    %387 = vector.load %arg6[%c7_67, %c0_68] : memref<8x8xf32, #tpu.memory_space<vmem>>, vector<1x8xf32>
    tpu.vector_store %arg6[%c7_67, %c0_68], %386 {strides = array<i32>} : memref<8x8xf32, #tpu.memory_space<vmem>>, vector<1x8xf32>,
    %c0_69 = arith.constant 0 : index
    %c0_70 = arith.constant 0 : index
    %388 = vector.load %arg6[%c0_69, %c0_70] : memref<8x8xf32, #tpu.memory_space<vmem>>, vector<8x8xf32>
    %c1_71 = arith.constant 1 : index
    %c0_72 = arith.constant 0 : index
    %c0_73 = arith.constant 0 : index
    %389 = vector.load %arg2[%c1_71, %c0_72, %c0_73] : memref<2x1x8xf32, #tpu.memory_space<vmem>>, vector<1x1x8xf32>
    %390 = vector.shape_cast %389 : vector<1x1x8xf32> to vector<1x8xf32>
    %cst_74 = arith.constant dense<0.000000e+00> : vector<1x8xf32>
    %391 = tpu.matmul %390, %388, %cst_74 {dimension_numbers = #tpu.dot_dimension_numbers<[1], [0], [0], [1], [0, 0, 1, 1], [], []>} : vector<1x8xf32>, vector<8x8xf32>, vector<1x8xf32> -> vector<1x8xf32>
    %392 = vector.broadcast %210 : f32 to vector<1x8xf32>
    %393 = arith.addf %391, %392 : vector<1x8xf32>
    %c1_75 = arith.constant 1 : index
    %c0_76 = arith.constant 0 : index
    %c0_77 = arith.constant 0 : index
    %394 = vector.load %arg4[%c1_75, %c0_76, %c0_77] : memref<2x1x8xf32, #tpu.memory_space<vmem>>, vector<1x1x8xf32>
    %395 = vector.shape_cast %394 : vector<1x1x8xf32> to vector<1x8xf32>
    %396 = vector.shape_cast %393 : vector<1x8xf32> to vector<1x1x8xf32>
    tpu.vector_store %arg4[%c1_75, %c0_76, %c0_77], %396 {strides = array<i32>} : memref<2x1x8xf32, #tpu.memory_space<vmem>>, vector<1x1x8xf32>,
    %c1_78 = arith.constant 1 : index
    %c0_79 = arith.constant 0 : index
    %c0_80 = arith.constant 0 : index
    %397 = vector.load %arg3[%c1_78, %c0_79, %c0_80] : memref<2x8x8xf32, #tpu.memory_space<vmem>>, vector<1x8x8xf32>
    %398 = vector.shape_cast %397 : vector<1x8x8xf32> to vector<8x8xf32>
    %cst_81 = arith.constant dense<0.000000e+00> : vector<8x8xf32>
    %399 = tpu.matmul %398, %388, %cst_81 {dimension_numbers = #tpu.dot_dimension_numbers<[1], [0], [0], [1], [0, 0, 1, 1], [], []>} : vector<8x8xf32>, vector<8x8xf32>, vector<8x8xf32> -> vector<8x8xf32>
    %cst_82 = arith.constant dense<0.000000e+00> : vector<8x8xf32>
    %400 = tpu.matmul %388, %399, %cst_82 {dimension_numbers = #tpu.dot_dimension_numbers<[0], [0], [1], [1], [0, 1, 1, 1], [], []>} : vector<8x8xf32>, vector<8x8xf32>, vector<8x8xf32> -> vector<8x8xf32>
    %401 = arith.addf %241, %400 : vector<8x8xf32>
    %c1_83 = arith.constant 1 : index
    %c0_84 = arith.constant 0 : index
    %c0_85 = arith.constant 0 : index
    %402 = vector.load %arg5[%c1_83, %c0_84, %c0_85] : memref<2x8x8xf32, #tpu.memory_space<vmem>>, vector<1x8x8xf32>
    %403 = vector.shape_cast %402 : vector<1x8x8xf32> to vector<8x8xf32>
    %404 = vector.shape_cast %401 : vector<8x8xf32> to vector<1x8x8xf32>
    tpu.vector_store %arg5[%c1_83, %c0_84, %c0_85], %404 {strides = array<i32>} : memref<2x8x8xf32, #tpu.memory_space<vmem>>, vector<1x8x8xf32>,
    return
  }
}

</mosaic_0001>

<bundles_post_ra>
// kernel: gp_module_forward.1
= control target key start
LH: loop header
LB: loop body
LE: loop exit
PB: predicated region body
PF: predicated region fallthrough
CT: control target
= control target key end

     0   :  { %11 = vsyncpa [#allocation5], 0  ;;  %s2210_s0 = inlined_call_operand.vmem [shape: f32[6], index: 0, kind: input, shape index: {}]   ;;  %s2211_s1 = inlined_call_operand.vmem [shape: f32[2,16,3], index: 1, kind: input, shape index: {}]   ;;  %s2212_s2 = inlined_call_operand.vmem [shape: f32[2,1,8], index: 2, kind: input, shape index: {}]   ;;  %s2213_s3 = inlined_call_operand.vmem [shape: f32[2,8,8], index: 3, kind: input, shape index: {}]   ;;  %s2214_s4 = inlined_call_operand.hbm [shape: f32[2,1,8], index: 4, kind: output, shape index: {0}]   ;;  %s2215_s5 = inlined_call_operand.hbm [shape: f32[2,8,8], index: 5, kind: output, shape index: {1}]  }
   0x1   :  { %12 = vsyncpa [#allocation4], 0 }
   0x2   :  { %13 = vsyncpa [#allocation8], 0  ;;  %s20_s20 = sshll.u32 %s2210_s0, 4  ;;  %s21_s20 = int_to_ptr.vmem [resolvable:$true] %s20_s20 }
   0x3   :  { %s1768_s21 = scalar_lea.vmem %s21_s20, 16  ;;  %p1773_p1 = scmp.lt.s32.totalorder %s21_s20, %s21_s20 }
   0x4   :  { %p1769_p0 = scmp.ne.s32.totalorder %s21_s20, %s1768_s21  ;;  %p1774_p2 = scmp.lt.s32.totalorder %s1768_s21, %s1768_s21 }
   0x6   :  { %p1775_p3 = por %p1774_p2, %p1773_p1 }
   0x8   :  { %p1776_p4 = pnand %p1775_p3, %p1769_p0 }
   0xa   :  { %1779 = shalt.err (!%p1776_p4)
}
   0xb   :  { %s1830_s22 = smov [#allocation3]  }
   0xc   :  { %23 = dma.vmem_to_smem %s21_s20, 16, %s1830_s22, [#allocation5]  }
   0xd   :  { %1824 = dma.done.wait [#allocation5], 16  }
   0xe   :  { %1825 = vsyncadd [#allocation5], 4294967280 }
   0xf   :  { %33 = sfence }
  0x10   :  { %v49_v0 = vld [vmem:[%s2211_s1] sm:$0xff]  ;;  %v50_v1 = vld [vmem:[%s2211_s1 + $0x8] sm:$0xff]  ;;  %vm53_vm0 = vcmask 23552   ;;  %v1831_v4 = vmov 0.0|0.0   ;;  %s41_s0 = sld [smem:[#allocation3]]  ;;  %vm1832_vm2 = vmmov 0   ;;  %v34_v14 = vlaneseq }
  0x11   :  { %v1656_v2 = vpack.c.bf16 %v50_v1, %v49_v0  ;;  %vm1891_vm1 = vmpackc.low %vm53_vm0, %vm53_vm0  ;;  %1662 = vmatprep.subr.bf16.mxu1 %v1831_v4  ;;  %v51_v5 = vmul.f32 %v49_v0, %v49_v0  ;;  %v1896_v6 = vmul.f32 %v50_v1, %v50_v1  ;;  %1602 = vmatprep.mubr.msk.f32.mxu0 %vm53_vm0, %v49_v0  ;;  %v1833_v7 = vmov 0.0   ;;  %s1934_s30 = sld [smem:[#allocation3 + $0x2]]  ;;  %s1842_s6 = smov 120  }
  0x12   :  { %1609 = vmatprep.mubr.msk.f32.mxu1 %vm1832_vm2, %v1833_v7  ;;  %v1834_v11 = vmov 1.0   ;;  %v1835_v13 = vmov 0   ;;  %v1920_v15 = vshrl.u32 %v34_v14, 7  ;;  %v37_v30 = vand.u32 127, %v34_v14  ;;  %s1544_s16 = sld [smem:[#allocation3 + $0x4]]  ;;  %s2081_s19 = sld [smem:[#allocation3 + $0x3]] }
  0x13   :  { %1658 = vmatprep.subr.msk.bf16.mxu0 %vm1891_vm1, %v1656_v2  ;;  %v1663_v8 = vpack.c.bf16 %v1896_v6, %v51_v5  ;;  %v214_v9 = vsel %vm53_vm0, %v51_v5, 0.0  ;;  %1700 = vset.pattern.permute.xlu0 %v1835_v13  ;;  %v1836_v40 = vmov 1   ;;  %v1837_v51 = vmov 2   ;;  %s1844_s20 = smov 8  }
  0x14   :  { %1661 = vmatpush3.bf16.xpose.msk.msra.mxu0 %vm1891_vm1, %v1656_v2  ;;  %215 = vadd.xlane.f32.xlu0 %v214_v9  ;;  %v1923_v16 = vsub.s32 0, %v1920_v15  ;;  %vm38_vm3 = vcmp.eq.s32.totalorder %v1920_v15, %v37_v30  ;;  %v1951_v47 = vsub.s32 1, %v1920_v15  ;;  %v1957_v58 = vsub.s32 2, %v1920_v15 }
  0x15   :  { %1665 = vmatpush3.bf16.xpose.msk.msra.mxu1 %vm1891_vm1, %v1663_v8  ;;  %1612 = vmatprep.subr.mxu0 %v1833_v7  ;;  %v1938_v31 = vsel %vm38_vm3, 1.0, %v1833_v7  ;;  %v1838_v62 = vmov 3   ;;  %vm303_vm4 = vcmask 58369   ;;  %vm375_vm5 = vcmask 60419  }
  0x16   :  { %1617 = vmatprep.subr.mxu1 %v1833_v7  ;;  %s44_s27 = smul.f32 %s41_s0, %s41_s0  ;;  %1701 = vset.pattern.permute.xlu1 %v1835_v13  ;;  %v1942_v33 = vmul.f32 0.001, %v1938_v31  ;;  %vm447_vm6 = vcmask 62469   ;;  %vm267_vm7 = vcmask 57344   ;;  %vm339_vm8 = vcmask 59394  }
  0x17   :  { %v239_v32 = vstv %s1934_s30  ;;  %vm411_vm9 = vcmask 61444   ;;  %vm483_vm10 = vcmask 63494   ;;  %vm513_vm11 = vcmask 64519  }
  0x18   :  { %v45_v10 = vstv %s44_s27  ;;  %vm518_vm12 = vcmask 64512  }
  0x19   :  { %1724 = vrcp.f32 %v45_v10 }
  0x1b   :  { %1603 = vmatmul.mubr.msk.f32.vlgmr.msra.gmra.mrb[0].mxu0 %vm53_vm0, %v50_v1 }
  0x1c   :  { %1610 = vmatmul.mubr.msk.f32.vlgmr.msra.gmra.mrb[0].mxu1 %vm53_vm0, %v1834_v11  ;;  %1614 = vmatprep.mubr.msk.f32.mxu0 %vm1832_vm2, %v1833_v7 }
  0x1d   :  { %1619 = vmatprep.mubr.msk.f32.mxu1 %vm1832_vm2, %v1833_v7 }
  0x23   :  { %v1725_v12 = vpop.eup %1724 }
  0x24   :  { %1676 = vpush %v1725_v12 }
  0x55   :  { %s1677_s28 = spop %1676 }
  0x56   :  { %s48_s29 = smul.f32 -0.5, %s1677_s28 }
  0x58   :  { %v1931_v26 = vstv %s48_s29 }
  0xa1   :  { %v216_v18 = vpop.xlane.xlu0 %215 }
  0xee   :  { %v1925_v17 = vpop.f32.mrb[0].mxu0 }
  0xef   :  { %v210_v19 = vpop.f32.mrb[0].mxu1  ;;  %v126_v20 = vpop.f32.mrb[1].mxu0 }
  0xf0   :  { %v1928_v21 = vrot.slane %v210_v19, %v1923_v16  ;;  %v226_v22 = vmul.f32 2.0, %v126_v20  ;;  %v1611_v23 = vpop.f32.mrb[1].mxu1 }
  0xf2   :  { %v224_v24 = vadd.f32 %v1928_v21, %v216_v18 }
  0xf4   :  { %v228_v25 = vsub.f32 %v224_v24, %v226_v22  ;;  %v1973_v24 = vsub.s32 3, %v1920_v15 }
  0xf6   :  { %v230_v27 = vmax.f32 %v228_v25, 0.0 }
  0xf8   :  { %v233_v28 = vmul.f32 %v1931_v26, %v230_v27 }
  0xfa   :  { %v235_v29 = vmul.f32 1.442695, %v233_v28 }
  0xfc   :  { %1726 = vpow2.f32 %v235_v29  ;;  %v1839_v29 = vmov 4  }
 0x106   :  { %v1727_v34 = vpop.eup %1726 }
 0x107   :  { %v240_v35 = vmul.f32 %v1727_v34, %v239_v32 }
 0x109   :  { %v243_v36 = vadd.f32 %v1942_v33, %v240_v35 }
 0x10b   :  { %1728 = vrsqrt.f32 %v243_v36 }
 0x115   :  { %v1729_v37 = vpop.eup %1728 }
 0x116   :  { %258 = vperm.xlu0 %1700, %v1729_v37   ;;  %v254_v38 = vrot.slane %v1729_v37, %v1923_v16 }
 0x118   :  { %v255_v39 = vmul.f32 %v254_v38, %v243_v36 }
 0x11a   :  { %271 = vperm.xlu1 %1701, %v255_v39  }
 0x11e   :  { %1702 = vset.pattern.permute.xlu1 %v1836_v40 }
 0x195   :  { %v259_v41 = vpop.permute.xlu0 %258 }
 0x196   :  { %v261_v42 = vmul.f32 %v259_v41, %v243_v36  ;;  %v1961_v63 = vmul.f32 %v259_v41, %v240_v35 }
 0x198   :  { %v277_v43 = vrot.slane %v261_v42, %v1923_v16  ;;  %v283_v0 = vrot.slane %v1961_v63, %v1923_v16 }
 0x199   :  { %v272_v44 = vpop.permute.xlu1 %271 }
 0x19a   :  { %v278_v45 = vmul.f32 %v277_v43, %v272_v44  ;;  %v284_v1 = vmul.f32 %v283_v0, %v272_v44  ;;  %v1990_v0 = vsub.s32 5, %v1920_v15 }
 0x19c   :  { %v279_v46 = vsub.f32 %v243_v36, %v278_v45  ;;  %v285_v2 = vsub.f32 %v240_v35, %v284_v1 }
 0x19e   :  { %1730 = vrsqrt.f32 %v279_v46 }
 0x1a8   :  { %v1731_v48 = vpop.eup %1730 }
 0x1a9   :  { %294 = vperm.xlu1 %1702, %v1731_v48   ;;  %v290_v49 = vrot.slane %v1731_v48, %v1951_v47  ;;  %v1982_v48 = vsub.s32 4, %v1920_v15 }
 0x1ab   :  { %v291_v50 = vmul.f32 %v290_v49, %v279_v46 }
 0x1ad   :  { %307 = vperm.xlu1 %1702, %v291_v50  }
 0x1b1   :  { %1703 = vset.pattern.permute.xlu1 %v1837_v51 }
 0x228   :  { %v295_v52 = vpop.permute.xlu1 %294 }
 0x229   :  { %v297_v53 = vmul.f32 %v295_v52, %v279_v46  ;;  %v1965_v5 = vmul.f32 %v295_v52, %v285_v2 }
 0x22b   :  { %v313_v54 = vrot.slane %v297_v53, %v1951_v47  ;;  %v319_v8 = vrot.slane %v1965_v5, %v1951_v47  ;;  %v1840_v53 = vmov 5  }
 0x22c   :  { %v308_v55 = vpop.permute.xlu1 %307 }
 0x22d   :  { %v314_v56 = vmul.f32 %v313_v54, %v308_v55  ;;  %v320_v9 = vmul.f32 %v319_v8, %v308_v55 }
 0x22f   :  { %v315_v57 = vsub.f32 %v279_v46, %v314_v56  ;;  %v321_v10 = vsub.f32 %v285_v2, %v320_v9  ;;  %v1841_v9 = vmov 6  }
 0x230   :  { %1708 = vset.pattern.permute.xlu0 %v1841_v9 }
 0x231   :  { %1732 = vrsqrt.f32 %v315_v57 }
 0x23b   :  { %v1733_v59 = vpop.eup %1732 }
 0x23c   :  { %330 = vperm.xlu1 %1703, %v1733_v59   ;;  %v326_v60 = vrot.slane %v1733_v59, %v1957_v58 }
 0x23e   :  { %v327_v61 = vmul.f32 %v326_v60, %v315_v57 }
 0x240   :  { %343 = vperm.xlu1 %1703, %v327_v61  }
 0x244   :  { %1704 = vset.pattern.permute.xlu1 %v1838_v62 }
 0x2bb   :  { %v331_v12 = vpop.permute.xlu1 %330 }
 0x2bc   :  { %v333_v14 = vmul.f32 %v331_v12, %v315_v57  ;;  %v1969_v18 = vmul.f32 %v331_v12, %v321_v10 }
 0x2be   :  { %v349_v19 = vrot.slane %v333_v14, %v1957_v58  ;;  %v355_v30 = vrot.slane %v1969_v18, %v1957_v58 }
 0x2bf   :  { %v344_v20 = vpop.permute.xlu1 %343 }
 0x2c0   :  { %v350_v22 = vmul.f32 %v349_v19, %v344_v20  ;;  %v356_v34 = vmul.f32 %v355_v30, %v344_v20 }
 0x2c2   :  { %v351_v23 = vsub.f32 %v315_v57, %v350_v22  ;;  %v357_v35 = vsub.f32 %v321_v10, %v356_v34 }
 0x2c4   :  { %1734 = vrsqrt.f32 %v351_v23 }
 0x2ce   :  { %v1735_v25 = vpop.eup %1734 }
 0x2cf   :  { %366 = vperm.xlu1 %1704, %v1735_v25   ;;  %v362_v27 = vrot.slane %v1735_v25, %v1973_v24 }
 0x2d1   :  { %v363_v28 = vmul.f32 %v362_v27, %v351_v23 }
 0x2d3   :  { %379 = vperm.xlu1 %1704, %v363_v28  }
 0x2d7   :  { %1705 = vset.pattern.permute.xlu1 %v1839_v29 }
 0x34e   :  { %v367_v36 = vpop.permute.xlu1 %366 }
 0x34f   :  { %v369_v37 = vmul.f32 %v367_v36, %v351_v23  ;;  %v370_v38 = vmul.f32 %v367_v36, %v357_v35  ;;  %v2000_v36 = vsub.s32 6, %v1920_v15 }
 0x351   :  { %v385_v39 = vrot.slane %v369_v37, %v1973_v24  ;;  %v391_v41 = vrot.slane %v370_v38, %v1973_v24 }
 0x352   :  { %v380_v42 = vpop.permute.xlu1 %379 }
 0x353   :  { %v386_v43 = vmul.f32 %v385_v39, %v380_v42  ;;  %v392_v44 = vmul.f32 %v391_v41, %v380_v42  ;;  %v1843_v42 = vmov 7  }
 0x355   :  { %v387_v45 = vsub.f32 %v351_v23, %v386_v43  ;;  %v393_v46 = vsub.f32 %v357_v35, %v392_v44 }
 0x357   :  { %1736 = vrsqrt.f32 %v387_v45 }
 0x361   :  { %v1737_v49 = vpop.eup %1736 }
 0x362   :  { %402 = vperm.xlu1 %1705, %v1737_v49   ;;  %v398_v50 = vrot.slane %v1737_v49, %v1982_v48 }
 0x364   :  { %v399_v52 = vmul.f32 %v398_v50, %v387_v45 }
 0x366   :  { %415 = vperm.xlu1 %1705, %v399_v52  }
 0x36a   :  { %1706 = vset.pattern.permute.xlu1 %v1840_v53 }
 0x3e1   :  { %v403_v54 = vpop.permute.xlu1 %402 }
 0x3e2   :  { %v405_v55 = vmul.f32 %v403_v54, %v387_v45  ;;  %v1986_v56 = vmul.f32 %v403_v54, %v393_v46 }
 0x3e4   :  { %v421_v57 = vrot.slane %v405_v55, %v1982_v48  ;;  %v427_v10 = vrot.slane %v1986_v56, %v1982_v48 }
 0x3e5   :  { %v416_v59 = vpop.permute.xlu1 %415 }
 0x3e6   :  { %v422_v60 = vmul.f32 %v421_v57, %v416_v59  ;;  %v428_v12 = vmul.f32 %v427_v10, %v416_v59 }
 0x3e8   :  { %v423_v61 = vsub.f32 %v387_v45, %v422_v60  ;;  %v429_v14 = vsub.f32 %v393_v46, %v428_v12  ;;  %v593_v12 = vld [vmem:[%s2213_s3] sm:$0xff] }
 0x3ea   :  { %1738 = vrsqrt.f32 %v423_v61 }
 0x3f4   :  { %v1739_v1 = vpop.eup %1738 }
 0x3f5   :  { %438 = vperm.xlu1 %1706, %v1739_v1   ;;  %v434_v2 = vrot.slane %v1739_v1, %v1990_v0 }
 0x3f7   :  { %v435_v8 = vmul.f32 %v434_v2, %v423_v61 }
 0x3f9   :  { %451 = vperm.xlu1 %1706, %v435_v8   ;;  %v516_v8 = vld [vmem:[%s2212_s2] sm:$0x1] }
 0x3fd   :  { %1707 = vset.pattern.permute.xlu1 %v1841_v9 }
 0x474   :  { %v439_v19 = vpop.permute.xlu1 %438 }
 0x475   :  { %v441_v20 = vmul.f32 %v439_v19, %v423_v61  ;;  %v442_v22 = vmul.f32 %v439_v19, %v429_v14  ;;  %v1559_v19 = vld [vmem:[%s2211_s1 + $0x18] sm:$0xff] }
 0x477   :  { %v457_v23 = vrot.slane %v441_v20, %v1990_v0  ;;  %v463_v25 = vrot.slane %v442_v22, %v1990_v0 }
 0x478   :  { %v452_v27 = vpop.permute.xlu1 %451 }
 0x479   :  { %v458_v28 = vmul.f32 %v457_v23, %v452_v27  ;;  %v464_v30 = vmul.f32 %v463_v25, %v452_v27  ;;  %v517_v27 = vstv %s1544_s16 }
 0x47b   :  { %v459_v34 = vsub.f32 %v423_v61, %v458_v28  ;;  %v465_v35 = vsub.f32 %v429_v14, %v464_v30  ;;  %v1558_v14 = vld [vmem:[%s2211_s1 + $0x10] sm:$0xff]  ;;  %s1555_s1 = sld [smem:[#allocation3 + $0x1]] }
 0x47c   :  { %v1666_v20 = vpack.c.bf16 %v1559_v19, %v1558_v14 }
 0x47d   :  { %1740 = vrsqrt.f32 %v459_v34 }
 0x481   :  { %s785_s15 = smul.f32 %s1555_s1, %s1555_s1 }
 0x483   :  { %v786_v23 = vstv %s785_s15 }
 0x487   :  { %v1741_v37 = vpop.eup %1740 }
 0x488   :  { %474 = vperm.xlu1 %1707, %v1741_v37   ;;  %v470_v39 = vrot.slane %v1741_v37, %v2000_v36 }
 0x48a   :  { %v471_v41 = vmul.f32 %v470_v39, %v459_v34 }
 0x48c   :  { %487 = vperm.xlu0 %1708, %v471_v41   ;;  %1709 = vset.pattern.permute.xlu1 %v1843_v42 }
 0x490   :  { %300 = vrot.lane.b32.xlu0 %v1965_v5, %s1842_s6 }
 0x491   :  { %1710 = vset.pattern.permute.xlu0 %v1835_v13 }
 0x494   :  { %372 = vrot.lane.b32.xlu0 %v370_v38, %s1842_s6 }
 0x498   :  { %444 = vrot.lane.b32.xlu0 %v442_v22, %s1842_s6 }
 0x507   :  { %v475_v15 = vpop.permute.xlu1 %474 }
 0x508   :  { %v477_v43 = vmul.f32 %v475_v15, %v459_v34  ;;  %v478_v44 = vmul.f32 %v475_v15, %v465_v35 }
 0x50a   :  { %v493_v45 = vrot.slane %v477_v43, %v2000_v36  ;;  %v499_v46 = vrot.slane %v478_v44, %v2000_v36 }
 0x50b   :  { %v488_v49 = vpop.permute.xlu0 %487 }
 0x50c   :  { %v494_v50 = vmul.f32 %v493_v45, %v488_v49  ;;  %v500_v52 = vmul.f32 %v499_v46, %v488_v49 }
 0x50e   :  { %v495_v5 = vsub.f32 %v459_v34, %v494_v50  ;;  %v501_v54 = vsub.f32 %v465_v35, %v500_v52  ;;  %v2055_v35 = vmul.f32 %v1559_v19, %v1559_v19 }
 0x50f   :  { %v301_v55 = vpop.permute.xlu0 %300 }
 0x510   :  { %1742 = vrsqrt.f32 %v495_v5  ;;  %304 = vst.msk [vmem:[#allocation2] sm:$0x2] %vm303_vm4, %v301_v55 }
 0x511   :  { %1744 = vrcp.f32 %v786_v23 }
 0x513   :  { %v373_v38 = vpop.permute.xlu0 %372 }
 0x514   :  { %376 = vst.msk [vmem:[#allocation2] sm:$0x8] %vm375_vm5, %v373_v38 }
 0x517   :  { %v445_v57 = vpop.permute.xlu0 %444 }
 0x518   :  { %448 = vst.msk [vmem:[#allocation2] sm:$0x20] %vm447_vm6, %v445_v57 }
 0x51a   :  { %v1743_v59 = vpop.eup %1742 }
 0x51b   :  { %505 = vperm.xlu1 %1709, %v1743_v59   ;;  %v1745_v25 = vpop.eup %1744  ;;  %v977_v59 = vstv %s2081_s19 }
 0x51c   :  { %1678 = vpush %v1745_v25 }
 0x51f   :  { %264 = vrot.lane.b32.xlu1 %v1961_v63, %s1842_s6 }
 0x523   :  { %336 = vrot.lane.b32.xlu1 %v1969_v18, %s1842_s6 }
 0x527   :  { %408 = vrot.lane.b32.xlu1 %v1986_v56, %s1842_s6 }
 0x52b   :  { %480 = vrot.lane.b32.xlu1 %v478_v44, %s1842_s6 }
 0x54d   :  { %s1679_s17 = spop %1678 }
 0x54e   :  { %s789_s18 = smul.f32 -0.5, %s1679_s17 }
 0x59a   :  { %v506_v60 = vpop.permute.xlu1 %505 }
 0x59b   :  { %v508_v61 = vmul.f32 %v506_v60, %v501_v54  ;;  %v2078_v54 = vstv %s789_s18 }
 0x59d   :  { %510 = vrot.lane.b32.xlu0 %v508_v61, %s1842_s6 }
 0x59e   :  { %v265_v1 = vpop.permute.xlu1 %264 }
 0x59f   :  { %268 = vst.msk [vmem:[#allocation2] sm:$0x1] %vm267_vm7, %v265_v1 }
 0x5a2   :  { %v337_v2 = vpop.permute.xlu1 %336 }
 0x5a3   :  { %340 = vst.msk [vmem:[#allocation2] sm:$0x4] %vm339_vm8, %v337_v2 }
 0x5a6   :  { %v409_v63 = vpop.permute.xlu1 %408 }
 0x5a7   :  { %412 = vst.msk [vmem:[#allocation2] sm:$0x10] %vm411_vm9, %v409_v63 }
 0x5aa   :  { %v481_v18 = vpop.permute.xlu1 %480 }
 0x5ab   :  { %484 = vst.msk [vmem:[#allocation2] sm:$0x40] %vm483_vm10, %v481_v18 }
 0x60f   :  { %v511_v56 = vpop.permute.xlu0 %510 }
 0x610   :  { %514 = vst.msk [vmem:[#allocation2] sm:$0x80] %vm513_vm11, %v511_v56 }
 0x617   :  { %v515_v10 = vld [vmem:[#allocation2] sm:$0xff] }
 0x618   :  { %667 = vxpose.xlu1.b32.start.end [1/1] (short) (narrow) %v515_v10, 8  ;;  %1613 = vmatpush3.msra.mxu0 %v515_v10 }
 0x619   :  { %1618 = vmatpush3.msra.mxu1 %v515_v10  ;;  %1615 = vmatmul.mubr.msk.f32.vlgmr.msra.gmra.mrb[2].mxu0 %vm518_vm12, %v516_v8 }
 0x61a   :  { %1620 = vmatmul.mubr.msk.f32.vlgmr.msra.gmra.mrb[2].mxu1 %vm518_vm12, %v593_v12  ;;  %1622 = vmatprep.subr.mxu0 %v1833_v7 }
 0x61b   :  { %1624 = vmatprep.mubr.msk.f32.mxu0 %vm1832_vm2, %v1833_v7  ;;  %1631 = vmatprep.mubr.msk.f32.mxu1 %vm53_vm0, %v1558_v14 }
 0x61c   :  { %1668 = vmatprep.subr.msk.bf16.mxu1 %vm1891_vm1, %v1666_v20 }
 0x620   :  { %1671 = vmatpush3.bf16.xpose.msk.msra.mxu1 %vm1891_vm1, %v1666_v20 }
 0x621   :  { %1641 = vmatprep.subr.mxu1 %v1833_v7 }
 0x627   :  { %1632 = vmatmul.mubr.msk.f32.vlgmr.msra.gmra.mrb[4].mxu1 %vm53_vm0, %v1559_v19 }
 0x628   :  { %1643 = vmatprep.mubr.msk.f32.mxu1 %vm1832_vm2, %v1833_v7 }
 0x636   :  { %1711 = vset.pattern.permute.xlu1 %v1835_v13  ;;  %v793_v13 = vmul.f32 %v1558_v14, %v1558_v14 }
 0x638   :  { %v952_v22 = vsel %vm53_vm0, %v793_v13, 0.0  ;;  %v1673_v15 = vpack.c.bf16 %v2055_v35, %v793_v13 }
 0x639   :  { %953 = vadd.xlane.f32.xlu0 %v952_v22 }
 0x698   :  { %v683_v28 = vpop.trf.xlu1 }
 0x6c6   :  { %v954_v49 = vpop.xlane.xlu0 %953 }
 0x6ec   :  { %v588_v30 = vpop.f32.mrb[2].mxu0 }
 0x6ed   :  { %v663_v34 = vpop.f32.mrb[2].mxu1  ;;  %v589_v37 = vadd.f32 %v588_v30, %v517_v27  ;;  %v1616_v39 = vpop.f32.mrb[3].mxu0 }
 0x6ee   :  { %v1621_v41 = vpop.f32.mrb[3].mxu1  ;;  %1623 = vmatpush3.msra.mxu0 %v663_v34 }
 0x6ef   :  { %1625 = vmatmul.mubr.msk.f32.vlgmr.msra.gmra.mrb[4].mxu0 %vm518_vm12, %v683_v28  ;;  %1672 = vmatprep.subr.bf16.mxu0 %v1831_v4  ;;  %592 = vst.msk [vmem:[#allocation6] sm:$0x1] %vm267_vm7, %v589_v37 }
 0x6f0   :  { %1638 = vmatprep.mubr.msk.f32.mxu0 %vm1832_vm2, %v1833_v7 }
 0x6f5   :  { %1675 = vmatpush3.bf16.xpose.msk.msra.mxu0 %vm1891_vm1, %v1673_v15 }
 0x6f6   :  { %1646 = vmatprep.subr.mxu0 %v1833_v7 }
 0x6fa   :  { %v2070_v43 = vpop.f32.mrb[4].mxu1 }
 0x6fb   :  { %v867_v4 = vpop.f32.mrb[5].mxu1 }
 0x6fc   :  { %1639 = vmatmul.mubr.msk.f32.vlgmr.msra.gmra.mrb[6].mxu0 %vm53_vm0, %v1834_v11  ;;  %v964_v50 = vmul.f32 2.0, %v867_v4 }
 0x6fd   :  { %1648 = vmatprep.mubr.msk.f32.mxu0 %vm1832_vm2, %v1833_v7 }
 0x7c2   :  { %v2072_v44 = vpop.f32.mrb[4].mxu0 }
 0x7c3   :  { %v1626_v45 = vpop.f32.mrb[5].mxu0 }
 0x7cf   :  { %v948_v46 = vpop.f32.mrb[6].mxu0 }
 0x7d0   :  { %v2075_v3 = vrot.slane %v948_v46, %v1923_v16  ;;  %v1640_v52 = vpop.f32.mrb[7].mxu0 }
 0x7d2   :  { %v962_v11 = vadd.f32 %v2075_v3, %v954_v49 }
 0x7d4   :  { %v966_v5 = vsub.f32 %v962_v11, %v964_v50 }
 0x7d6   :  { %v968_v55 = vmax.f32 %v966_v5, 0.0 }
 0x7d8   :  { %v971_v38 = vmul.f32 %v2078_v54, %v968_v55 }
 0x7da   :  { %v973_v57 = vmul.f32 1.442695, %v971_v38 }
 0x7dc   :  { %1746 = vpow2.f32 %v973_v57 }
 0x7e6   :  { %v1747_v60 = vpop.eup %1746 }
 0x7e7   :  { %v2086_v61 = vmul.f32 %v1747_v60, %v977_v59 }
 0x7e9   :  { %v980_v1 = vadd.f32 %v2086_v61, %v1942_v33 }
 0x7eb   :  { %1748 = vrsqrt.f32 %v980_v1 }
 0x7f5   :  { %v1749_v2 = vpop.eup %1748 }
 0x7f6   :  { %990 = vperm.xlu0 %1710, %v1749_v2   ;;  %v986_v63 = vrot.slane %v1749_v2, %v1923_v16 }
 0x7f8   :  { %v987_v18 = vmul.f32 %v986_v63, %v980_v1 }
 0x7fa   :  { %1002 = vperm.xlu1 %1711, %v987_v18   ;;  %1713 = vset.pattern.permute.xlu0 %v1837_v51 }
 0x7fe   :  { %1712 = vset.pattern.permute.xlu1 %v1836_v40 }
 0x875   :  { %v991_v56 = vpop.permute.xlu0 %990 }
 0x876   :  { %v993_v8 = vmul.f32 %v991_v56, %v980_v1 }
 0x878   :  { %v1008_v10 = vrot.slane %v993_v8, %v1923_v16 }
 0x879   :  { %v1003_v12 = vpop.permute.xlu1 %1002 }
 0x87a   :  { %v1009_v14 = vmul.f32 %v1008_v10, %v1003_v12 }
 0x87c   :  { %v1010_v19 = vsub.f32 %v980_v1, %v1009_v14 }
 0x87e   :  { %1750 = vrsqrt.f32 %v1010_v19 }
 0x888   :  { %v1751_v33 = vpop.eup %1750 }
 0x889   :  { %1025 = vperm.xlu1 %1712, %v1751_v33   ;;  %v1021_v20 = vrot.slane %v1751_v33, %v1951_v47 }
 0x88b   :  { %v1022_v13 = vmul.f32 %v1021_v20, %v1010_v19 }
 0x88d   :  { %1037 = vperm.xlu1 %1712, %v1022_v13  }
 0x891   :  { %1714 = vset.pattern.permute.xlu1 %v1837_v51 }
 0x908   :  { %v1026_v22 = vpop.permute.xlu1 %1025 }
 0x909   :  { %v1028_v23 = vmul.f32 %v1026_v22, %v1010_v19 }
 0x90b   :  { %v1043_v40 = vrot.slane %v1028_v23, %v1951_v47 }
 0x90c   :  { %v1038_v25 = vpop.permute.xlu1 %1037 }
 0x90d   :  { %v1044_v27 = vmul.f32 %v1043_v40, %v1038_v25 }
 0x90f   :  { %v1045_v28 = vsub.f32 %v1010_v19, %v1044_v27 }
 0x911   :  { %1752 = vrsqrt.f32 %v1045_v28 }
 0x91b   :  { %v1753_v30 = vpop.eup %1752 }
 0x91c   :  { %1060 = vperm.xlu0 %1713, %v1753_v30   ;;  %v1056_v34 = vrot.slane %v1753_v30, %v1957_v58 }
 0x91e   :  { %v1057_v37 = vmul.f32 %v1056_v34, %v1045_v28 }
 0x920   :  { %1072 = vperm.xlu1 %1714, %v1057_v37   ;;  %1716 = vset.pattern.permute.xlu0 %v1838_v62 }
 0x924   :  { %1715 = vset.pattern.permute.xlu1 %v1838_v62 }
 0x99b   :  { %v1061_v39 = vpop.permute.xlu0 %1060 }
 0x99c   :  { %v1063_v51 = vmul.f32 %v1061_v39, %v1045_v28 }
 0x99e   :  { %v1078_v41 = vrot.slane %v1063_v51, %v1957_v58 }
 0x99f   :  { %v1073_v15 = vpop.permute.xlu1 %1072 }
 0x9a0   :  { %v1079_v4 = vmul.f32 %v1078_v41, %v1073_v15 }
 0x9a2   :  { %v1080_v45 = vsub.f32 %v1045_v28, %v1079_v4 }
 0x9a4   :  { %1754 = vrsqrt.f32 %v1080_v45 }
 0x9ae   :  { %v1755_v46 = vpop.eup %1754 }
 0x9af   :  { %1095 = vperm.xlu1 %1715, %v1755_v46   ;;  %v1091_v49 = vrot.slane %v1755_v46, %v1973_v24 }
 0x9b1   :  { %v1092_v50 = vmul.f32 %v1091_v49, %v1080_v45 }
 0x9b3   :  { %1107 = vperm.xlu0 %1716, %v1092_v50   ;;  %1717 = vset.pattern.permute.xlu1 %v1839_v29  ;;  %v2108_v29 = vmul.f32 %v991_v56, %v2086_v61 }
 0x9b5   :  { %v1014_v2 = vrot.slane %v2108_v29, %v1923_v16 }
 0x9b7   :  { %1718 = vset.pattern.permute.xlu0 %v1840_v53  ;;  %v1015_v63 = vmul.f32 %v1014_v2, %v1003_v12 }
 0x9b9   :  { %v1016_v18 = vsub.f32 %v2086_v61, %v1015_v63 }
 0x9bb   :  { %v1029_v8 = vmul.f32 %v1026_v22, %v1016_v18 }
 0x9bd   :  { %v1049_v10 = vrot.slane %v1029_v8, %v1951_v47 }
 0x9bf   :  { %v1050_v14 = vmul.f32 %v1049_v10, %v1038_v25 }
 0x9c1   :  { %v1051_v19 = vsub.f32 %v1016_v18, %v1050_v14 }
 0x9c3   :  { %v2114_v33 = vmul.f32 %v1061_v39, %v1051_v19 }
 0x9c5   :  { %v1084_v20 = vrot.slane %v2114_v33, %v1957_v58 }
 0xa2e   :  { %v1096_v52 = vpop.permute.xlu1 %1095 }
 0xa2f   :  { %v1098_v62 = vmul.f32 %v1096_v52, %v1080_v45 }
 0xa31   :  { %v1113_v11 = vrot.slane %v1098_v62, %v1973_v24 }
 0xa32   :  { %v1108_v5 = vpop.permute.xlu0 %1107 }
 0xa33   :  { %v1114_v55 = vmul.f32 %v1113_v11, %v1108_v5 }
 0xa35   :  { %v1115_v38 = vsub.f32 %v1080_v45, %v1114_v55 }
 0xa37   :  { %1756 = vrsqrt.f32 %v1115_v38 }
 0xa41   :  { %v1757_v57 = vpop.eup %1756 }
 0xa42   :  { %1130 = vperm.xlu1 %1717, %v1757_v57   ;;  %v1126_v60 = vrot.slane %v1757_v57, %v1982_v48 }
 0xa44   :  { %v1127_v1 = vmul.f32 %v1126_v60, %v1115_v38 }
 0xa46   :  { %1142 = vperm.xlu1 %1717, %v1127_v1  }
 0xa4a   :  { %1719 = vset.pattern.permute.xlu1 %v1840_v53  ;;  %v1085_v53 = vmul.f32 %v1084_v20, %v1073_v15 }
 0xa4c   :  { %v1086_v13 = vsub.f32 %v1051_v19, %v1085_v53 }
 0xa4e   :  { %v1099_v56 = vmul.f32 %v1096_v52, %v1086_v13 }
 0xa50   :  { %v1119_v23 = vrot.slane %v1099_v56, %v1973_v24 }
 0xa52   :  { %v1120_v40 = vmul.f32 %v1119_v23, %v1108_v5  ;;  %v244_v23 = vmul.f32 0.0001, %v1938_v31 }
 0xa54   :  { %v1121_v16 = vsub.f32 %v1086_v13, %v1120_v40 }
 0xac1   :  { %v1131_v12 = vpop.permute.xlu1 %1130 }
 0xac2   :  { %v1133_v27 = vmul.f32 %v1131_v12, %v1115_v38  ;;  %v1134_v61 = vmul.f32 %v1131_v12, %v1121_v16  ;;  %v1569_v12 = vld [vmem:[%s2213_s3 + $0x8] sm:$0xff]  ;;  %s1845_s3 = smov [#allocation6]  }
 0xac3   :  { %s1514_s25 = sshll.u32 %s1845_s3, 4  ;;  %s1515_s25 = int_to_ptr.vmem [resolvable:$true] %s1514_s25 }
 0xac4   :  { %v1148_v22 = vrot.slane %v1133_v27, %v1982_v48  ;;  %v1154_v24 = vrot.slane %v1134_v61, %v1982_v48  ;;  %v965_v27 = vmul.f32 2.0, %v2070_v43  ;;  %v227_v43 = vmul.f32 2.0, %v1925_v17  ;;  %s1780_s26 = scalar_lea.vmem %s1515_s25, 32  ;;  %p1785_p6 = scmp.lt.s32.totalorder %s1515_s25, %s1515_s25 }
 0xac5   :  { %v1143_v47 = vpop.permute.xlu1 %1142  ;;  %p1781_p5 = scmp.ne.s32.totalorder %s1515_s25, %s1780_s26  ;;  %p1786_p7 = scmp.lt.s32.totalorder %s1780_s26, %s1780_s26 }
 0xac6   :  { %v1149_v25 = vmul.f32 %v1148_v22, %v1143_v47  ;;  %v1155_v37 = vmul.f32 %v1154_v24, %v1143_v47 }
 0xac7   :  { %p1787_p8 = por %p1786_p7, %p1785_p6 }
 0xac8   :  { %v1150_v28 = vsub.f32 %v1115_v38, %v1149_v25  ;;  %v1156_v39 = vsub.f32 %v1121_v16, %v1155_v37 }
 0xac9   :  { %p1788_p9 = pnand %p1787_p8, %p1781_p5 }
 0xaca   :  { %1758 = vrsqrt.f32 %v1150_v28 }
 0xad4   :  { %v1759_v30 = vpop.eup %1758 }
 0xad5   :  { %1165 = vperm.xlu0 %1718, %v1759_v30   ;;  %v1161_v58 = vrot.slane %v1759_v30, %v1990_v0 }
 0xad7   :  { %v1162_v34 = vmul.f32 %v1161_v58, %v1150_v28 }
 0xad9   :  { %1177 = vperm.xlu1 %1719, %v1162_v34   ;;  %1721 = vset.pattern.permute.xlu0 %v1841_v9 }
 0xadd   :  { %1720 = vset.pattern.permute.xlu1 %v1841_v9 }
 0xb54   :  { %v1166_v51 = vpop.permute.xlu0 %1165 }
 0xb55   :  { %v1168_v41 = vmul.f32 %v1166_v51, %v1150_v28  ;;  %v1169_v15 = vmul.f32 %v1166_v51, %v1156_v39 }
 0xb57   :  { %v1183_v4 = vrot.slane %v1168_v41, %v1990_v0  ;;  %v1189_v45 = vrot.slane %v1169_v15, %v1990_v0 }
 0xb58   :  { %v1178_v46 = vpop.permute.xlu1 %1177 }
 0xb59   :  { %v1184_v49 = vmul.f32 %v1183_v4, %v1178_v46  ;;  %v1190_v50 = vmul.f32 %v1189_v45, %v1178_v46 }
 0xb5b   :  { %v1185_v52 = vsub.f32 %v1150_v28, %v1184_v49  ;;  %v1191_v62 = vsub.f32 %v1156_v39, %v1190_v50 }
 0xb5d   :  { %1760 = vrsqrt.f32 %v1185_v52 }
 0xb67   :  { %v1761_v11 = vpop.eup %1760 }
 0xb68   :  { %1200 = vperm.xlu1 %1720, %v1761_v11   ;;  %v1196_v9 = vrot.slane %v1761_v11, %v2000_v36 }
 0xb6a   :  { %v1197_v48 = vmul.f32 %v1196_v9, %v1185_v52 }
 0xb6c   :  { %1212 = vperm.xlu0 %1721, %v1197_v48   ;;  %1722 = vset.pattern.permute.xlu1 %v1843_v42 }
 0xb70   :  { %1031 = vrot.lane.b32.xlu0 %v1029_v8, %s1842_s6 }
 0xb71   :  { %1723 = vset.pattern.permute.xlu0 %v1843_v42 }
 0xb74   :  { %1101 = vrot.lane.b32.xlu0 %v1099_v56, %s1842_s6  ;;  %v955_v56 = vsel %vm53_vm0, %v2055_v35, 0.0 }
 0xb78   :  { %1171 = vrot.lane.b32.xlu0 %v1169_v15, %s1842_s6 }
 0xbe7   :  { %v1201_v0 = vpop.permute.xlu1 %1200 }
 0xbe8   :  { %v1203_v5 = vmul.f32 %v1201_v0, %v1185_v52  ;;  %v1204_v55 = vmul.f32 %v1201_v0, %v1191_v62 }
 0xbea   :  { %v1218_v38 = vrot.slane %v1203_v5, %v2000_v36  ;;  %v1224_v57 = vrot.slane %v1204_v55, %v2000_v36 }
 0xbeb   :  { %v1213_v60 = vpop.permute.xlu0 %1212 }
 0xbec   :  { %v1219_v1 = vmul.f32 %v1218_v38, %v1213_v60  ;;  %v1225_v2 = vmul.f32 %v1224_v57, %v1213_v60 }
 0xbee   :  { %v1220_v63 = vsub.f32 %v1185_v52, %v1219_v1  ;;  %v1226_v18 = vsub.f32 %v1191_v62, %v1225_v2 }
 0xbef   :  { %v1032_v10 = vpop.permute.xlu0 %1031 }
 0xbf0   :  { %1762 = vrsqrt.f32 %v1220_v63  ;;  %1034 = vst.msk [vmem:[#allocation2] sm:$0x2] %vm303_vm4, %v1032_v10 }
 0xbf3   :  { %v1102_v42 = vpop.permute.xlu0 %1101 }
 0xbf4   :  { %1104 = vst.msk [vmem:[#allocation2] sm:$0x8] %vm375_vm5, %v1102_v42 }
 0xbf7   :  { %v1172_v8 = vpop.permute.xlu0 %1171 }
 0xbf8   :  { %1174 = vst.msk [vmem:[#allocation2] sm:$0x20] %vm447_vm6, %v1172_v8 }
 0xbfa   :  { %v1763_v14 = vpop.eup %1762 }
 0xbfb   :  { %1230 = vperm.xlu1 %1722, %v1763_v14  }
 0xbff   :  { %996 = vrot.lane.b32.xlu1 %v2108_v29, %s1842_s6 }
 0xc03   :  { %1066 = vrot.lane.b32.xlu1 %v2114_v33, %s1842_s6  ;;  %v217_v33 = vsel %vm53_vm0, %v1896_v6, 0.0  ;;  %v1567_v6 = vld [vmem:[%s2212_s2 + $0x1] sm:$0x1]  ;;  %s1557_s2 = sld [smem:[#allocation3 + $0x5]] }
 0xc07   :  { %1136 = vrot.lane.b32.xlu1 %v1134_v61, %s1842_s6 }
 0xc09   :  { %v1242_v30 = vstv %s1557_s2 }
 0xc0b   :  { %1206 = vrot.lane.b32.xlu1 %v1204_v55, %s1842_s6 }
 0xc7a   :  { %v1231_v36 = vpop.permute.xlu1 %1230 }
 0xc7b   :  { %v1233_v19 = vmul.f32 %v1231_v36, %v1226_v18 }
 0xc7d   :  { %1235 = vrot.lane.b32.xlu0 %v1233_v19, %s1842_s6 }
 0xc7e   :  { %v997_v20 = vpop.permute.xlu1 %996 }
 0xc7f   :  { %999 = vst.msk [vmem:[#allocation2] sm:$0x1] %vm267_vm7, %v997_v20 }
 0xc82   :  { %v1067_v53 = vpop.permute.xlu1 %1066 }
 0xc83   :  { %1069 = vst.msk [vmem:[#allocation2] sm:$0x4] %vm339_vm8, %v1067_v53 }
 0xc86   :  { %v1137_v13 = vpop.permute.xlu1 %1136 }
 0xc87   :  { %1139 = vst.msk [vmem:[#allocation2] sm:$0x10] %vm411_vm9, %v1137_v13 }
 0xc8a   :  { %v1207_v29 = vpop.permute.xlu1 %1206 }
 0xc8b   :  { %1209 = vst.msk [vmem:[#allocation2] sm:$0x40] %vm483_vm10, %v1207_v29 }
 0xc9c   :  { %218 = vadd.xlane.f32.xlu0 %v217_v33 }
 0xca0   :  { %956 = vadd.xlane.f32.xlu0 %v955_v56 }
 0xcb6   :  { %246 = vrot.lane.b32.xlu0 %v244_v23, %s1844_s20 }
 0xcef   :  { %v1236_v40 = vpop.permute.xlu0 %1235 }
 0xcf0   :  { %1238 = vst.msk [vmem:[#allocation2] sm:$0x80] %vm513_vm11, %v1236_v40 }
 0xcf7   :  { %v1239_v16 = vld [vmem:[#allocation2] sm:$0xff] }
 0xcf8   :  { %1393 = vxpose.xlu1.b32.start.end [1/1] (short) (narrow) %v1239_v16, 8  ;;  %1642 = vmatpush3.msra.mxu1 %v1239_v16 }
 0xcf9   :  { %1647 = vmatpush3.msra.mxu0 %v1239_v16  ;;  %1651 = vmatprep.subr.mxu1 %v1833_v7 }
 0xcfa   :  { %1649 = vmatmul.mubr.msk.f32.vlgmr.msra.gmra.mrb[8].mxu0 %vm518_vm12, %v1569_v12  ;;  %1644 = vmatmul.mubr.msk.f32.vlgmr.msra.gmra.mrb[6].mxu1 %vm518_vm12, %v1567_v6 }
 0xcfb   :  { %1653 = vmatprep.mubr.msk.f32.mxu1 %vm1832_vm2, %v1833_v7 }
 0xd16   :  { %773 = vrot.lane.b32.xlu1 %v2072_v44, %s1844_s20 }
 0xd29   :  { %v219_v31 = vpop.xlane.xlu0 %218 }
 0xd2a   :  { %v225_v44 = vadd.f32 %v1928_v21, %v219_v31 }
 0xd2d   :  { %v957_v35 = vpop.xlane.xlu0 %956 }
 0xd2e   :  { %v963_v61 = vadd.f32 %v2075_v3, %v957_v35  ;;  %v229_v3 = vsub.f32 %v225_v44, %v227_v43 }
 0xd30   :  { %v967_v22 = vsub.f32 %v963_v61, %v965_v27  ;;  %v231_v24 = vmax.f32 %v229_v3, 0.0 }
 0xd31   :  { %v247_v15 = vpop.permute.xlu0 %246 }
 0xd32   :  { %v234_v37 = vmul.f32 %v1931_v26, %v231_v24  ;;  %v969_v17 = vmax.f32 %v967_v22, 0.0 }
 0xd34   :  { %v237_v39 = vmul.f32 1.442695, %v234_v37  ;;  %v972_v21 = vmul.f32 %v2078_v54, %v969_v17 }
 0xd36   :  { %1764 = vpow2.f32 %v237_v39  ;;  %v975_v52 = vmul.f32 1.442695, %v972_v21 }
 0xd38   :  { %1766 = vpow2.f32 %v975_v52 }
 0xd40   :  { %v1765_v51 = vpop.eup %1764 }
 0xd41   :  { %v241_v41 = vmul.f32 %v1765_v51, %v239_v32 }
 0xd42   :  { %v1767_v26 = vpop.eup %1766 }
 0xd43   :  { %v249_v46 = vadd.f32 %v247_v15, %v241_v41 }
 0xd78   :  { %v1409_v25 = vpop.trf.xlu1 }
 0xd88   :  { %v774_v4 = vpop.permute.xlu1 %773 }
 0xd89   :  { %v776_v50 = vadd.f32 %v774_v4, %v249_v46 }
 0xdcd   :  { %v1389_v47 = vpop.f32.mrb[8].mxu0  ;;  %v1312_v7 = vpop.f32.mrb[6].mxu1 }
 0xdce   :  { %v1650_v28 = vpop.f32.mrb[9].mxu0  ;;  %1652 = vmatpush3.msra.mxu1 %v1389_v47  ;;  %v1313_v58 = vadd.f32 %v1312_v7, %v1242_v30  ;;  %v1645_v34 = vpop.f32.mrb[7].mxu1 }
 0xdcf   :  { %1654 = vmatmul.mubr.msk.f32.vlgmr.msra.gmra.mrb[8].mxu1 %vm518_vm12, %v1409_v25 }
 0xdd0   :  { %1317 = vst.msk [vmem:[#allocation6 + $0x1] sm:$0x1] %vm267_vm7, %v1313_v58 }
 0xea2   :  { %v1494_v45 = vpop.f32.mrb[8].mxu1 }
 0xea3   :  { %1499 = vrot.lane.b32.xlu0 %v1494_v45, %s1844_s20  ;;  %v1655_v49 = vpop.f32.mrb[9].mxu1 }
 0xea7   :  { %778 = vrot.lane.b32.xlu0 %v776_v50, %s1842_s6 }
 0xea8   :  { %1791 = shalt.err (!%p1788_p9)
}
 0xea9   :  { %s1792_s28 = scalar_lea.hbm %s2214_s4, 32 }
 0xeaa   :  { %p1793_p10 = scmp.ne.s32.totalorder %s2214_s4, %s1792_s28  ;;  %p1796_p11 = scmp.lt.u32.totalorder %s1792_s28, %s2214_s4 }
 0xeac   :  { %p1798_p12 = pnand %p1796_p11, %p1793_p10 }
 0xeae   :  { %1801 = shalt.err (!%p1798_p12)
}
 0xeaf   :  { %s1846_s9 = smov 16   ;;  %s1847_s10 = smov 1   ;;  %v979_v32 = vmul.f32 %v1767_v26, %v977_v59 }
 0xeb0   :  { %1520 = dma.vmem_to_hbm [thread:$0]  %s1515_s25, 32, %s2214_s4, [#allocation4], %s1846_s9, %s1846_s9, %s1847_s10  }
 0xeb1   :  { %v981_v54 = vadd.f32 %v979_v32, %v247_v15  ;;  %s1848_s13 = smov [#allocation7]  }
 0xeb2   :  { %s1526_s14 = sshll.u32 %s1848_s13, 4  ;;  %s1527_s14 = int_to_ptr.vmem [resolvable:$true] %s1526_s14 }
 0xeb3   :  { %s1802_s1 = scalar_lea.vmem %s1527_s14, 256  ;;  %p1807_p0 = scmp.lt.s32.totalorder %s1527_s14, %s1527_s14 }
 0xeb4   :  { %p1803_p13 = scmp.ne.s32.totalorder %s1527_s14, %s1802_s1  ;;  %p1808_p1 = scmp.lt.s32.totalorder %s1802_s1, %s1802_s1 }
 0xeb6   :  { %p1809_p2 = por %p1808_p1, %p1807_p0 }
 0xeb8   :  { %p1810_p3 = pnand %p1809_p2, %p1803_p13 }
 0xf15   :  { %v1500_v62 = vpop.permute.xlu0 %1499 }
 0xf16   :  { %v1502_v11 = vadd.f32 %v1500_v62, %v981_v54 }
 0xf18   :  { %1504 = vrot.lane.b32.xlu0 %v1502_v11, %s1842_s6 }
 0xf19   :  { %v779_v9 = vpop.permute.xlu0 %778 }
 0xf1a   :  { %781 = vst.msk [vmem:[#allocation7] sm:$0xff] %vm518_vm12, %v779_v9 }
 0xf8a   :  { %v1505_v48 = vpop.permute.xlu0 %1504 }
 0xf8b   :  { %1508 = vst.msk [vmem:[#allocation7 + $0x8] sm:$0xff] %vm518_vm12, %v1505_v48 }
 0xf8c   :  { %1813 = shalt.err (!%p1810_p3)
}
 0xf8d   :  { %s1814_s6 = scalar_lea.hbm %s2215_s5, 256 }
 0xf8e   :  { %p1815_p4 = scmp.ne.s32.totalorder %s2215_s5, %s1814_s6  ;;  %p1818_p5 = scmp.lt.u32.totalorder %s1814_s6, %s2215_s5 }
 0xf90   :  { %p1820_p6 = pnand %p1818_p5, %p1815_p4 }
 0xf92   :  { %1823 = shalt.err (!%p1820_p6)
}
 0xf93   :  { %s1849_s21 = smov 128  }
 0xf94   :  { %1532 = dma.vmem_to_hbm [thread:$0]  %s1527_s14, 256, %s2215_s5, [#allocation8], %s1849_s21, %s1849_s21, %s1844_s20  }
 0xf95   :  { %1826 = dma.done.wait [#allocation4], 32  }
 0xf96   :  { %1827 = vsyncadd [#allocation4], 4294967264 }
 0xf97   :  { %1828 = dma.done.wait [#allocation8], 256  }
 0xf98   :  { %1829 = vsyncadd [#allocation8], 4294967040 }
 0xf99   :  { %1539 = vsyncpa [#allocation4], 1 }
 0xf9a   :  { %1540 = vsyncpa [#allocation8], 1 }
 0xf9b   :  { %1541 = vsyncpa [#allocation5], 1 }

</bundles_post_ra>
